<compile_context>
chip_gen: v5e
topology: v5e:2x2
jax: 0.10.0
libtpu: 0.0.40
codegen_flags: <defaults>
</compile_context>

<pallas_src>
import functools

import jax
import jax.numpy as jnp
from jax import lax
from jax.experimental import pallas as pl
from jax.experimental.pallas import tpu as pltpu


def _round_up(n, m):
    return ((n + m - 1) // m) * m


# ----------------------------- fused kernel ----------------------------------
def _fused_lstm_fc_kernel(x_ref, wih0_ref, b0_ref, whh0_ref, wcat_ref, bcat_ref,
                          fcw_ref, fcb_ref, out_ref, gproj_sc,
                          *, seq_len, batch_pad, num_layers, hidden, unroll):
    S, Bp, L, H = seq_len, batch_pad, num_layers, hidden
    G = 4 * H

    # ---- hoisted per-lane activation constants (single sigmoid pass) -------
    # PyTorch gate order [i, f, g, o]; lanes [2H, 3H) are the tanh "g" gate.
    # tanh(x) = 2*sigmoid(2x) - 1  =>  act = sigmoid(gates*scale)*mult + offs
    lane = lax.broadcasted_iota(jnp.int32, (Bp, G), 1)
    g_mask = (lane >= 2 * H) & (lane < 3 * H)
    scale_b = jnp.where(g_mask, 2.0, 1.0).astype(jnp.float32)
    mult_b = scale_b
    offs_b = jnp.where(g_mask, -1.0, 0.0).astype(jnp.float32)

    # ---- layer-0 input projection for ALL timesteps: one MXU matmul --------
    gproj_sc[...] = (
        jnp.dot(x_ref[...], wih0_ref[...], preferred_element_type=jnp.float32)
        + b0_ref[...]
    ).reshape(S, Bp, G)

    # loop-invariant weights, loaded once
    whh0 = whh0_ref[...]                                   # (H, 4H)
    wcats = [wcat_ref[i] for i in range(L - 1)]            # each (2H, 4H)
    bcats = [bcat_ref[i] for i in range(L - 1)]            # each (1, 4H)

    def lstm_cell(gates, h_old, c_old, m):
        act = jax.nn.sigmoid(gates * scale_b) * mult_b + offs_b
        i_g = act[:, 0 * H:1 * H]
        f_g = act[:, 1 * H:2 * H]
        g_g = act[:, 2 * H:3 * H]
        o_g = act[:, 3 * H:4 * H]
        c_new = f_g * c_old + i_g * g_g
        h_new = o_g * jnp.tanh(c_new)
        # arithmetic blend: keep the old state on inactive wavefront steps
        h_out = h_old + m * (h_new - h_old)
        c_out = c_old + m * (c_new - c_old)
        return h_out, c_out

    zeros = jnp.zeros((Bp, H), jnp.float32)
    init = (tuple(zeros for _ in range(L)), tuple(zeros for _ in range(L)))

    # ---- wavefront over the layer stack: layer l handles t = w - l ---------
    # All active layers at a given wavefront step only depend on carries from
    # the previous step, so their matmuls can be issued back-to-back.
    def wave_step(w, carry):
        hs, cs = carry
        new_hs, new_cs = [], []
        for l in range(L):                      # static (trace-time) layer loop
            t = w - l
            m = jnp.logical_and(t >= 0, t < S).astype(jnp.float32)
            if l == 0:
                t_safe = jnp.minimum(t, S - 1)
                gates = gproj_sc[t_safe] + jnp.dot(
                    hs[0], whh0, preferred_element_type=jnp.float32)
            else:
                # fused input+recurrent matmul: [h_{l-1,t}, h_{l,t-1}] @ [Wih;Whh]
                lhs = jnp.concatenate([hs[l - 1], hs[l]], axis=1)     # (Bp, 2H)
                gates = jnp.dot(lhs, wcats[l - 1],
                                preferred_element_type=jnp.float32) + bcats[l - 1]
            h_new, c_new = lstm_cell(gates, hs[l], cs[l], m)
            new_hs.append(h_new)
            new_cs.append(c_new)
        return tuple(new_hs), tuple(new_cs)

    hs_fin, _ = lax.fori_loop(0, S + L - 1, wave_step, init, unroll=unroll)
    h_last = hs_fin[L - 1]

    # ---- final Linear on the last layer's h_T (lane-dense padded output) ---
    out_ref[...] = (
        jnp.dot(h_last, fcw_ref[...], preferred_element_type=jnp.float32)
        + fcb_ref[...]
    )


# ------------------------ one-time parameter preparation ----------------------
def prepare_params(layer_params, fc_w, fc_b):
    """Pre-transpose / stack / pad weights once (hoisted out of the forward).

    layer_params: tuple of (w_ih (4H, in), w_hh (4H, H), b (1, 4H)) per layer,
    with b = b_ih + b_hh and PyTorch gate order [i, f, g, o].
    """
    L = len(layer_params)
    H = layer_params[0][1].shape[1]
    G = 4 * H
    O = fc_w.shape[0]
    Op = _round_up(max(O, 1), 128)

    wih0_t = jnp.asarray(layer_params[0][0], jnp.float32).T          # (I, 4H)
    b0 = jnp.asarray(layer_params[0][2], jnp.float32).reshape(1, G)  # (1, 4H)
    whh0_t = jnp.asarray(layer_params[0][1], jnp.float32).T          # (H, 4H)

    if L > 1:
        # [W_ih_l^T ; W_hh_l^T] stacked over layers 1..L-1 -> (L-1, 2H, 4H)
        wcat = jnp.stack([
            jnp.concatenate([jnp.asarray(p[0], jnp.float32).T,
                             jnp.asarray(p[1], jnp.float32).T], axis=0)
            for p in layer_params[1:]])
        bcat = jnp.stack([jnp.asarray(p[2], jnp.float32).reshape(1, G)
                          for p in layer_params[1:]])                # (L-1, 1, 4H)
    else:
        wcat = jnp.zeros((1, 2 * H, G), jnp.float32)                 # unused dummy
        bcat = jnp.zeros((1, 1, G), jnp.float32)

    fcw_pad = jnp.zeros((H, Op), jnp.float32).at[:, :O].set(
        jnp.asarray(fc_w, jnp.float32).T)
    fcb_pad = jnp.zeros((1, Op), jnp.float32).at[:, :O].set(
        jnp.asarray(fc_b, jnp.float32))

    return (wih0_t, b0, whh0_t, wcat, bcat, fcw_pad, fcb_pad)


# ------------------------------ full forward ----------------------------------
@functools.partial(jax.jit, static_argnames=("num_layers", "output_size"))
def forest_fire_lstm_forward(x, wih0_t, b0, whh0_t, wcat, bcat, fcw_pad, fcb_pad,
                             *, num_layers, output_size):
    """x: (batch, seq, input_size) -> (batch, output_size)."""
    B, S, I = x.shape
    L = num_layers
    H = whh0_t.shape[0]
    G = 4 * H
    Op = fcw_pad.shape[1]
    Bp = _round_up(max(B, 1), 8)        # f32 sublane tile

    # batch_first -> time-major, pad batch rows, flatten (S, Bp) -> S*Bp rows.
    x_sbi = jnp.swapaxes(x.astype(jnp.float32), 0, 1)          # (S, B, I)
    x_sbi = jnp.pad(x_sbi, ((0, 0), (0, Bp - B), (0, 0)))      # (S, Bp, I)
    x_flat = x_sbi.reshape(S * Bp, I)                          # (S*Bp, I)

    # Guarded unroll: fully unroll only short wavefront loops.
    total_steps = S + L - 1
    unroll = True if total_steps <= 16 else 8

    kernel = functools.partial(_fused_lstm_fc_kernel, seq_len=S, batch_pad=Bp,
                               num_layers=L, hidden=H, unroll=unroll)

    # NOTE: if S*B is scaled up, chunk the gproj scratch over time and/or raise
    # vmem_limit_bytes (v5e: 16 MiB scoped default, v7x: 64 MiB physical); at
    # these shapes everything fits comfortably.  A parallel batch grid axis
    # (v7x, 2 TCs) only pays off once Bp >= 16, so the call stays gridless.
    out_padded = pl.pallas_call(
        kernel,
        out_shape=jax.ShapeDtypeStruct((Bp, Op), jnp.float32),
        scratch_shapes=[
            pltpu.VMEM((S, Bp, G), jnp.float32),   # layer-0 input projections
        ],
    )(x_flat, wih0_t, b0, whh0_t, wcat, bcat, fcw_pad, fcb_pad)

    return out_padded[:B, :output_size]


# --------------------------- pure-JAX reference --------------------------------
def reference_forward(x, layer_params, fc_w, fc_b):
    inp = x.astype(jnp.float32)                        # (B, S, I)
    for (w_ih, w_hh, b) in layer_params:
        H = w_hh.shape[1]
        B = inp.shape[0]
        h0 = jnp.zeros((B, H), jnp.float32)
        c0 = jnp.zeros((B, H), jnp.float32)

        def step(carry, x_t, w_ih=w_ih, w_hh=w_hh, b=b, H=H):
            h, c = carry
            gates = x_t @ w_ih.T + h @ w_hh.T + b[0]
            i, f, g, o = jnp.split(gates, 4, axis=-1)
            i = jax.nn.sigmoid(i)
            f = jax.nn.sigmoid(f)
            g = jnp.tanh(g)
            o = jax.nn.sigmoid(o)
            c = f * c + i * g
            h = o * jnp.tanh(c)
            return (h, c), h

        _, hs = jax.lax.scan(step, (h0, c0), jnp.swapaxes(inp, 0, 1))
        inp = jnp.swapaxes(hs, 0, 1)
    return inp[:, -1, :] @ fc_w.T + fc_b


# ----------------------------------- main --------------------------------------
if __name__ == "__main__":
    # Small shapes consistent with the module: x is (batch, seq, input_size)
    batch, seq, input_size = 2, 8, 4
    hidden_size, num_layers, output_size = 32, 2, 3

    key = jax.random.PRNGKey(0)
    k_x, key = jax.random.split(key)
    x = jax.random.normal(k_x, (batch, seq, input_size), dtype=jnp.float32)

    # Deterministic parameter init (uniform(-k, k), k = 1/sqrt(hidden) like PyTorch)
    bound = 1.0 / jnp.sqrt(jnp.float32(hidden_size))
    layer_params = []
    for layer in range(num_layers):
        in_sz = input_size if layer == 0 else hidden_size
        k1, k2, k3, k4, key = jax.random.split(key, 5)
        w_ih = jax.random.uniform(k1, (4 * hidden_size, in_sz),
                                  minval=-bound, maxval=bound, dtype=jnp.float32)
        w_hh = jax.random.uniform(k2, (4 * hidden_size, hidden_size),
                                  minval=-bound, maxval=bound, dtype=jnp.float32)
        b_ih = jax.random.uniform(k3, (4 * hidden_size,),
                                  minval=-bound, maxval=bound, dtype=jnp.float32)
        b_hh = jax.random.uniform(k4, (4 * hidden_size,),
                                  minval=-bound, maxval=bound, dtype=jnp.float32)
        layer_params.append((w_ih, w_hh, (b_ih + b_hh).reshape(1, 4 * hidden_size)))

    k5, k6, key = jax.random.split(key, 3)
    fc_w = jax.random.uniform(k5, (output_size, hidden_size),
                              minval=-bound, maxval=bound, dtype=jnp.float32)
    fc_b = jax.random.uniform(k6, (output_size,),
                              minval=-bound, maxval=bound, dtype=jnp.float32)

    # One-time parameter preparation (hoisted out of the per-call forward).
    prepped = prepare_params(tuple(layer_params), fc_w, fc_b)

    out = forest_fire_lstm_forward(x, *prepped,
                                   num_layers=num_layers, output_size=output_size)
    out = jax.block_until_ready(out)

    ref = reference_forward(x, layer_params, fc_w, fc_b)
    assert out.shape == (batch, output_size)
    assert jnp.allclose(out, ref, atol=1e-4, rtol=1e-4), (out, ref)

    print("KERNEL_OK")
</pallas_src>

<mosaic_0001>
module attributes {stable_mosaic.version = 11 : i64} {
  func.func @_fused_lstm_fc_kernel(%arg0: memref<64x4xf32, #tpu.memory_space<vmem>>, %arg1: memref<4x128xf32, #tpu.memory_space<vmem>>, %arg2: memref<1x128xf32, #tpu.memory_space<vmem>>, %arg3: memref<32x128xf32, #tpu.memory_space<vmem>>, %arg4: memref<1x64x128xf32, #tpu.memory_space<vmem>>, %arg5: memref<1x1x128xf32, #tpu.memory_space<vmem>>, %arg6: memref<32x128xf32, #tpu.memory_space<vmem>>, %arg7: memref<1x128xf32, #tpu.memory_space<vmem>>, %arg8: memref<8x128xf32, #tpu.memory_space<vmem>>, %arg9: memref<8x8x128xf32, #tpu.memory_space<vmem>>) attributes {dimension_semantics = [], scalar_prefetch = 0 : i64, scratch_operands = 1 : i64, tpu.core_type = #tpu.core_type<tc>} {
    %0 = tpu.iota {dimensions = array<i32: 1>} : vector<8x128xi32>
    %c64_i32 = arith.constant 64 : i32
    %1 = vector.broadcast %c64_i32 : i32 to vector<8x128xi32>
    %2 = arith.cmpi sge, %0, %1 : vector<8x128xi32>
    %c96_i32 = arith.constant 96 : i32
    %3 = vector.broadcast %c96_i32 : i32 to vector<8x128xi32>
    %4 = arith.cmpi slt, %0, %3 : vector<8x128xi32>
    %5 = arith.andi %2, %4 : vector<8x128xi1>
    %cst = arith.constant 2.000000e+00 : f32
    %cst_0 = arith.constant 1.000000e+00 : f32
    %6 = vector.broadcast %cst : f32 to vector<8x128xf32>
    %7 = vector.broadcast %cst_0 : f32 to vector<8x128xf32>
    %8 = arith.select %5, %6, %7 : vector<8x128xi1>, vector<8x128xf32>
    %cst_1 = arith.constant -1.000000e+00 : f32
    %cst_2 = arith.constant 0.000000e+00 : f32
    %9 = vector.broadcast %cst_1 : f32 to vector<8x128xf32>
    %10 = vector.broadcast %cst_2 : f32 to vector<8x128xf32>
    %11 = arith.select %5, %9, %10 : vector<8x128xi1>, vector<8x128xf32>
    %c0 = arith.constant 0 : index
    %c0_3 = arith.constant 0 : index
    %12 = vector.load %arg0[%c0, %c0_3] : memref<64x4xf32, #tpu.memory_space<vmem>>, vector<64x4xf32>
    %c0_4 = arith.constant 0 : index
    %c0_5 = arith.constant 0 : index
    %13 = vector.load %arg1[%c0_4, %c0_5] : memref<4x128xf32, #tpu.memory_space<vmem>>, vector<4x128xf32>
    %cst_6 = arith.constant dense<0.000000e+00> : vector<64x128xf32>
    %14 = tpu.matmul %12, %13, %cst_6 {dimension_numbers = #tpu.dot_dimension_numbers<[1], [0], [0], [1], [0, 0, 1, 1], [], []>} : vector<64x4xf32>, vector<4x128xf32>, vector<64x128xf32> -> vector<64x128xf32>
    %c0_7 = arith.constant 0 : index
    %c0_8 = arith.constant 0 : index
    %15 = vector.load %arg2[%c0_7, %c0_8] : memref<1x128xf32, #tpu.memory_space<vmem>>, vector<1x128xf32>
    %16 = vector.broadcast %15 : vector<1x128xf32> to vector<64x128xf32>
    %17 = arith.addf %14, %16 : vector<64x128xf32>
    %18 = vector.shape_cast %17 : vector<64x128xf32> to vector<8x8x128xf32>
    %c0_9 = arith.constant 0 : index
    %c0_10 = arith.constant 0 : index
    %c0_11 = arith.constant 0 : index
    %19 = vector.load %arg9[%c0_9, %c0_10, %c0_11] : memref<8x8x128xf32, #tpu.memory_space<vmem>>, vector<8x8x128xf32>
    tpu.vector_store %arg9[%c0_9, %c0_10, %c0_11], %18 {strides = array<i32>} : memref<8x8x128xf32, #tpu.memory_space<vmem>>, vector<8x8x128xf32>,
    %c0_12 = arith.constant 0 : index
    %c0_13 = arith.constant 0 : index
    %20 = vector.load %arg3[%c0_12, %c0_13] : memref<32x128xf32, #tpu.memory_space<vmem>>, vector<32x128xf32>
    %c0_14 = arith.constant 0 : index
    %c0_15 = arith.constant 0 : index
    %c0_16 = arith.constant 0 : index
    %21 = vector.load %arg4[%c0_14, %c0_15, %c0_16] : memref<1x64x128xf32, #tpu.memory_space<vmem>>, vector<1x64x128xf32>
    %22 = vector.shape_cast %21 : vector<1x64x128xf32> to vector<64x128xf32>
    %c0_17 = arith.constant 0 : index
    %c0_18 = arith.constant 0 : index
    %c0_19 = arith.constant 0 : index
    %23 = vector.load %arg5[%c0_17, %c0_18, %c0_19] : memref<1x1x128xf32, #tpu.memory_space<vmem>>, vector<1x1x128xf32>
    %24 = vector.shape_cast %23 : vector<1x1x128xf32> to vector<1x128xf32>
    %cst_20 = arith.constant 0.000000e+00 : f32
    %25 = vector.broadcast %cst_20 : f32 to vector<8x32xf32>
    %c0_i32 = arith.constant 0 : i32
    %c0_i32_21 = arith.constant 0 : i32
    %26 = arith.subi %c0_i32, %c0_i32_21 : i32
    %c0_i32_22 = arith.constant 0 : i32
    %27 = arith.cmpi sge, %26, %c0_i32_22 : i32
    %c8_i32 = arith.constant 8 : i32
    %28 = arith.cmpi slt, %26, %c8_i32 : i32
    %29 = arith.andi %27, %28 : i1
    %30 = arith.extui %29 : i1 to i32
    %31 = arith.sitofp %30 : i32 to f32
    %c7_i32 = arith.constant 7 : i32
    %32 = arith.minsi %26, %c7_i32 : i32
    %33 = arith.index_cast %32 : i32 to index
    %c0_23 = arith.constant 0 : index
    %c0_24 = arith.constant 0 : index
    %34 = vector.load %arg9[%33, %c0_23, %c0_24] : memref<8x8x128xf32, #tpu.memory_space<vmem>>, vector<1x8x128xf32>
    %35 = vector.shape_cast %34 : vector<1x8x128xf32> to vector<8x128xf32>
    %cst_25 = arith.constant dense<0.000000e+00> : vector<8x128xf32>
    %36 = tpu.matmul %25, %20, %cst_25 {dimension_numbers = #tpu.dot_dimension_numbers<[1], [0], [0], [1], [0, 0, 1, 1], [], []>} : vector<8x32xf32>, vector<32x128xf32>, vector<8x128xf32> -> vector<8x128xf32>
    %37 = arith.addf %35, %36 : vector<8x128xf32>
    %38 = arith.mulf %37, %8 : vector<8x128xf32>
    %39 = arith.negf %38 : vector<8x128xf32>
    %40 = math.exp %39 : vector<8x128xf32>
    %cst_26 = arith.constant 1.000000e+00 : f32
    %41 = vector.broadcast %cst_26 : f32 to vector<8x128xf32>
    %42 = arith.addf %41, %40 : vector<8x128xf32>
    %43 = arith.divf %41, %42 : vector<8x128xf32>
    %44 = arith.mulf %43, %8 : vector<8x128xf32>
    %45 = arith.addf %44, %11 : vector<8x128xf32>
    %46 = vector.extract_strided_slice %45 {offsets = [0, 0], sizes = [8, 32], strides = [1, 1]} : vector<8x128xf32> to vector<8x32xf32>
    %47 = vector.extract_strided_slice %45 {offsets = [0, 32], sizes = [8, 32], strides = [1, 1]} : vector<8x128xf32> to vector<8x32xf32>
    %48 = vector.extract_strided_slice %45 {offsets = [0, 64], sizes = [8, 32], strides = [1, 1]} : vector<8x128xf32> to vector<8x32xf32>
    %49 = vector.extract_strided_slice %45 {offsets = [0, 96], sizes = [8, 32], strides = [1, 1]} : vector<8x128xf32> to vector<8x32xf32>
    %50 = arith.mulf %47, %25 : vector<8x32xf32>
    %51 = arith.mulf %46, %48 : vector<8x32xf32>
    %52 = arith.addf %50, %51 : vector<8x32xf32>
    %53 = math.tanh %52 : vector<8x32xf32>
    %54 = arith.mulf %49, %53 : vector<8x32xf32>
    %55 = arith.subf %54, %25 : vector<8x32xf32>
    %56 = vector.broadcast %31 : f32 to vector<8x32xf32>
    %57 = arith.mulf %56, %55 : vector<8x32xf32>
    %58 = arith.addf %25, %57 : vector<8x32xf32>
    %59 = arith.subf %52, %25 : vector<8x32xf32>
    %60 = vector.broadcast %31 : f32 to vector<8x32xf32>
    %61 = arith.mulf %60, %59 : vector<8x32xf32>
    %62 = arith.addf %25, %61 : vector<8x32xf32>
    %c1_i32 = arith.constant 1 : i32
    %63 = arith.subi %c0_i32, %c1_i32 : i32
    %c0_i32_27 = arith.constant 0 : i32
    %64 = arith.cmpi sge, %63, %c0_i32_27 : i32
    %c8_i32_28 = arith.constant 8 : i32
    %65 = arith.cmpi slt, %63, %c8_i32_28 : i32
    %66 = arith.andi %64, %65 : i1
    %67 = arith.extui %66 : i1 to i32
    %68 = arith.sitofp %67 : i32 to f32
    %69 = tpu.concatenate %25, %25 in 1 : vector<8x32xf32>, vector<8x32xf32> -> vector<8x64xf32>
    %cst_29 = arith.constant dense<0.000000e+00> : vector<8x128xf32>
    %70 = tpu.matmul %69, %22, %cst_29 {dimension_numbers = #tpu.dot_dimension_numbers<[1], [0], [0], [1], [0, 0, 1, 1], [], []>} : vector<8x64xf32>, vector<64x128xf32>, vector<8x128xf32> -> vector<8x128xf32>
    %71 = vector.broadcast %24 : vector<1x128xf32> to vector<8x128xf32>
    %72 = arith.addf %70, %71 : vector<8x128xf32>
    %73 = arith.mulf %72, %8 : vector<8x128xf32>
    %74 = arith.negf %73 : vector<8x128xf32>
    %75 = math.exp %74 : vector<8x128xf32>
    %cst_30 = arith.constant 1.000000e+00 : f32
    %76 = vector.broadcast %cst_30 : f32 to vector<8x128xf32>
    %77 = arith.addf %76, %75 : vector<8x128xf32>
    %78 = arith.divf %76, %77 : vector<8x128xf32>
    %79 = arith.mulf %78, %8 : vector<8x128xf32>
    %80 = arith.addf %79, %11 : vector<8x128xf32>
    %81 = vector.extract_strided_slice %80 {offsets = [0, 0], sizes = [8, 32], strides = [1, 1]} : vector<8x128xf32> to vector<8x32xf32>
    %82 = vector.extract_strided_slice %80 {offsets = [0, 32], sizes = [8, 32], strides = [1, 1]} : vector<8x128xf32> to vector<8x32xf32>
    %83 = vector.extract_strided_slice %80 {offsets = [0, 64], sizes = [8, 32], strides = [1, 1]} : vector<8x128xf32> to vector<8x32xf32>
    %84 = vector.extract_strided_slice %80 {offsets = [0, 96], sizes = [8, 32], strides = [1, 1]} : vector<8x128xf32> to vector<8x32xf32>
    %85 = arith.mulf %82, %25 : vector<8x32xf32>
    %86 = arith.mulf %81, %83 : vector<8x32xf32>
    %87 = arith.addf %85, %86 : vector<8x32xf32>
    %88 = math.tanh %87 : vector<8x32xf32>
    %89 = arith.mulf %84, %88 : vector<8x32xf32>
    %90 = arith.subf %89, %25 : vector<8x32xf32>
    %91 = vector.broadcast %68 : f32 to vector<8x32xf32>
    %92 = arith.mulf %91, %90 : vector<8x32xf32>
    %93 = arith.addf %25, %92 : vector<8x32xf32>
    %94 = arith.subf %87, %25 : vector<8x32xf32>
    %95 = vector.broadcast %68 : f32 to vector<8x32xf32>
    %96 = arith.mulf %95, %94 : vector<8x32xf32>
    %97 = arith.addf %25, %96 : vector<8x32xf32>
    %c1_i32_31 = arith.constant 1 : i32
    %c0_i32_32 = arith.constant 0 : i32
    %98 = arith.subi %c1_i32_31, %c0_i32_32 : i32
    %c0_i32_33 = arith.constant 0 : i32
    %99 = arith.cmpi sge, %98, %c0_i32_33 : i32
    %c8_i32_34 = arith.constant 8 : i32
    %100 = arith.cmpi slt, %98, %c8_i32_34 : i32
    %101 = arith.andi %99, %100 : i1
    %102 = arith.extui %101 : i1 to i32
    %103 = arith.sitofp %102 : i32 to f32
    %c7_i32_35 = arith.constant 7 : i32
    %104 = arith.minsi %98, %c7_i32_35 : i32
    %105 = arith.index_cast %104 : i32 to index
    %c0_36 = arith.constant 0 : index
    %c0_37 = arith.constant 0 : index
    %106 = vector.load %arg9[%105, %c0_36, %c0_37] : memref<8x8x128xf32, #tpu.memory_space<vmem>>, vector<1x8x128xf32>
    %107 = vector.shape_cast %106 : vector<1x8x128xf32> to vector<8x128xf32>
    %cst_38 = arith.constant dense<0.000000e+00> : vector<8x128xf32>
    %108 = tpu.matmul %58, %20, %cst_38 {dimension_numbers = #tpu.dot_dimension_numbers<[1], [0], [0], [1], [0, 0, 1, 1], [], []>} : vector<8x32xf32>, vector<32x128xf32>, vector<8x128xf32> -> vector<8x128xf32>
    %109 = arith.addf %107, %108 : vector<8x128xf32>
    %110 = arith.mulf %109, %8 : vector<8x128xf32>
    %111 = arith.negf %110 : vector<8x128xf32>
    %112 = math.exp %111 : vector<8x128xf32>
    %cst_39 = arith.constant 1.000000e+00 : f32
    %113 = vector.broadcast %cst_39 : f32 to vector<8x128xf32>
    %114 = arith.addf %113, %112 : vector<8x128xf32>
    %115 = arith.divf %113, %114 : vector<8x128xf32>
    %116 = arith.mulf %115, %8 : vector<8x128xf32>
    %117 = arith.addf %116, %11 : vector<8x128xf32>
    %118 = vector.extract_strided_slice %117 {offsets = [0, 0], sizes = [8, 32], strides = [1, 1]} : vector<8x128xf32> to vector<8x32xf32>
    %119 = vector.extract_strided_slice %117 {offsets = [0, 32], sizes = [8, 32], strides = [1, 1]} : vector<8x128xf32> to vector<8x32xf32>
    %120 = vector.extract_strided_slice %117 {offsets = [0, 64], sizes = [8, 32], strides = [1, 1]} : vector<8x128xf32> to vector<8x32xf32>
    %121 = vector.extract_strided_slice %117 {offsets = [0, 96], sizes = [8, 32], strides = [1, 1]} : vector<8x128xf32> to vector<8x32xf32>
    %122 = arith.mulf %119, %62 : vector<8x32xf32>
    %123 = arith.mulf %118, %120 : vector<8x32xf32>
    %124 = arith.addf %122, %123 : vector<8x32xf32>
    %125 = math.tanh %124 : vector<8x32xf32>
    %126 = arith.mulf %121, %125 : vector<8x32xf32>
    %127 = arith.subf %126, %58 : vector<8x32xf32>
    %128 = vector.broadcast %103 : f32 to vector<8x32xf32>
    %129 = arith.mulf %128, %127 : vector<8x32xf32>
    %130 = arith.addf %58, %129 : vector<8x32xf32>
    %131 = arith.subf %124, %62 : vector<8x32xf32>
    %132 = vector.broadcast %103 : f32 to vector<8x32xf32>
    %133 = arith.mulf %132, %131 : vector<8x32xf32>
    %134 = arith.addf %62, %133 : vector<8x32xf32>
    %c1_i32_40 = arith.constant 1 : i32
    %135 = arith.subi %c1_i32_31, %c1_i32_40 : i32
    %c0_i32_41 = arith.constant 0 : i32
    %136 = arith.cmpi sge, %135, %c0_i32_41 : i32
    %c8_i32_42 = arith.constant 8 : i32
    %137 = arith.cmpi slt, %135, %c8_i32_42 : i32
    %138 = arith.andi %136, %137 : i1
    %139 = arith.extui %138 : i1 to i32
    %140 = arith.sitofp %139 : i32 to f32
    %141 = tpu.concatenate %58, %93 in 1 : vector<8x32xf32>, vector<8x32xf32> -> vector<8x64xf32>
    %cst_43 = arith.constant dense<0.000000e+00> : vector<8x128xf32>
    %142 = tpu.matmul %141, %22, %cst_43 {dimension_numbers = #tpu.dot_dimension_numbers<[1], [0], [0], [1], [0, 0, 1, 1], [], []>} : vector<8x64xf32>, vector<64x128xf32>, vector<8x128xf32> -> vector<8x128xf32>
    %143 = vector.broadcast %24 : vector<1x128xf32> to vector<8x128xf32>
    %144 = arith.addf %142, %143 : vector<8x128xf32>
    %145 = arith.mulf %144, %8 : vector<8x128xf32>
    %146 = arith.negf %145 : vector<8x128xf32>
    %147 = math.exp %146 : vector<8x128xf32>
    %cst_44 = arith.constant 1.000000e+00 : f32
    %148 = vector.broadcast %cst_44 : f32 to vector<8x128xf32>
    %149 = arith.addf %148, %147 : vector<8x128xf32>
    %150 = arith.divf %148, %149 : vector<8x128xf32>
    %151 = arith.mulf %150, %8 : vector<8x128xf32>
    %152 = arith.addf %151, %11 : vector<8x128xf32>
    %153 = vector.extract_strided_slice %152 {offsets = [0, 0], sizes = [8, 32], strides = [1, 1]} : vector<8x128xf32> to vector<8x32xf32>
    %154 = vector.extract_strided_slice %152 {offsets = [0, 32], sizes = [8, 32], strides = [1, 1]} : vector<8x128xf32> to vector<8x32xf32>
    %155 = vector.extract_strided_slice %152 {offsets = [0, 64], sizes = [8, 32], strides = [1, 1]} : vector<8x128xf32> to vector<8x32xf32>
    %156 = vector.extract_strided_slice %152 {offsets = [0, 96], sizes = [8, 32], strides = [1, 1]} : vector<8x128xf32> to vector<8x32xf32>
    %157 = arith.mulf %154, %97 : vector<8x32xf32>
    %158 = arith.mulf %153, %155 : vector<8x32xf32>
    %159 = arith.addf %157, %158 : vector<8x32xf32>
    %160 = math.tanh %159 : vector<8x32xf32>
    %161 = arith.mulf %156, %160 : vector<8x32xf32>
    %162 = arith.subf %161, %93 : vector<8x32xf32>
    %163 = vector.broadcast %140 : f32 to vector<8x32xf32>
    %164 = arith.mulf %163, %162 : vector<8x32xf32>
    %165 = arith.addf %93, %164 : vector<8x32xf32>
    %166 = arith.subf %159, %97 : vector<8x32xf32>
    %167 = vector.broadcast %140 : f32 to vector<8x32xf32>
    %168 = arith.mulf %167, %166 : vector<8x32xf32>
    %169 = arith.addf %97, %168 : vector<8x32xf32>
    %c2_i32 = arith.constant 2 : i32
    %c0_i32_45 = arith.constant 0 : i32
    %170 = arith.subi %c2_i32, %c0_i32_45 : i32
    %c0_i32_46 = arith.constant 0 : i32
    %171 = arith.cmpi sge, %170, %c0_i32_46 : i32
    %c8_i32_47 = arith.constant 8 : i32
    %172 = arith.cmpi slt, %170, %c8_i32_47 : i32
    %173 = arith.andi %171, %172 : i1
    %174 = arith.extui %173 : i1 to i32
    %175 = arith.sitofp %174 : i32 to f32
    %c7_i32_48 = arith.constant 7 : i32
    %176 = arith.minsi %170, %c7_i32_48 : i32
    %177 = arith.index_cast %176 : i32 to index
    %c0_49 = arith.constant 0 : index
    %c0_50 = arith.constant 0 : index
    %178 = vector.load %arg9[%177, %c0_49, %c0_50] : memref<8x8x128xf32, #tpu.memory_space<vmem>>, vector<1x8x128xf32>
    %179 = vector.shape_cast %178 : vector<1x8x128xf32> to vector<8x128xf32>
    %cst_51 = arith.constant dense<0.000000e+00> : vector<8x128xf32>
    %180 = tpu.matmul %130, %20, %cst_51 {dimension_numbers = #tpu.dot_dimension_numbers<[1], [0], [0], [1], [0, 0, 1, 1], [], []>} : vector<8x32xf32>, vector<32x128xf32>, vector<8x128xf32> -> vector<8x128xf32>
    %181 = arith.addf %179, %180 : vector<8x128xf32>
    %182 = arith.mulf %181, %8 : vector<8x128xf32>
    %183 = arith.negf %182 : vector<8x128xf32>
    %184 = math.exp %183 : vector<8x128xf32>
    %cst_52 = arith.constant 1.000000e+00 : f32
    %185 = vector.broadcast %cst_52 : f32 to vector<8x128xf32>
    %186 = arith.addf %185, %184 : vector<8x128xf32>
    %187 = arith.divf %185, %186 : vector<8x128xf32>
    %188 = arith.mulf %187, %8 : vector<8x128xf32>
    %189 = arith.addf %188, %11 : vector<8x128xf32>
    %190 = vector.extract_strided_slice %189 {offsets = [0, 0], sizes = [8, 32], strides = [1, 1]} : vector<8x128xf32> to vector<8x32xf32>
    %191 = vector.extract_strided_slice %189 {offsets = [0, 32], sizes = [8, 32], strides = [1, 1]} : vector<8x128xf32> to vector<8x32xf32>
    %192 = vector.extract_strided_slice %189 {offsets = [0, 64], sizes = [8, 32], strides = [1, 1]} : vector<8x128xf32> to vector<8x32xf32>
    %193 = vector.extract_strided_slice %189 {offsets = [0, 96], sizes = [8, 32], strides = [1, 1]} : vector<8x128xf32> to vector<8x32xf32>
    %194 = arith.mulf %191, %134 : vector<8x32xf32>
    %195 = arith.mulf %190, %192 : vector<8x32xf32>
    %196 = arith.addf %194, %195 : vector<8x32xf32>
    %197 = math.tanh %196 : vector<8x32xf32>
    %198 = arith.mulf %193, %197 : vector<8x32xf32>
    %199 = arith.subf %198, %130 : vector<8x32xf32>
    %200 = vector.broadcast %175 : f32 to vector<8x32xf32>
    %201 = arith.mulf %200, %199 : vector<8x32xf32>
    %202 = arith.addf %130, %201 : vector<8x32xf32>
    %203 = arith.subf %196, %134 : vector<8x32xf32>
    %204 = vector.broadcast %175 : f32 to vector<8x32xf32>
    %205 = arith.mulf %204, %203 : vector<8x32xf32>
    %206 = arith.addf %134, %205 : vector<8x32xf32>
    %c1_i32_53 = arith.constant 1 : i32
    %207 = arith.subi %c2_i32, %c1_i32_53 : i32
    %c0_i32_54 = arith.constant 0 : i32
    %208 = arith.cmpi sge, %207, %c0_i32_54 : i32
    %c8_i32_55 = arith.constant 8 : i32
    %209 = arith.cmpi slt, %207, %c8_i32_55 : i32
    %210 = arith.andi %208, %209 : i1
    %211 = arith.extui %210 : i1 to i32
    %212 = arith.sitofp %211 : i32 to f32
    %213 = tpu.concatenate %130, %165 in 1 : vector<8x32xf32>, vector<8x32xf32> -> vector<8x64xf32>
    %cst_56 = arith.constant dense<0.000000e+00> : vector<8x128xf32>
    %214 = tpu.matmul %213, %22, %cst_56 {dimension_numbers = #tpu.dot_dimension_numbers<[1], [0], [0], [1], [0, 0, 1, 1], [], []>} : vector<8x64xf32>, vector<64x128xf32>, vector<8x128xf32> -> vector<8x128xf32>
    %215 = vector.broadcast %24 : vector<1x128xf32> to vector<8x128xf32>
    %216 = arith.addf %214, %215 : vector<8x128xf32>
    %217 = arith.mulf %216, %8 : vector<8x128xf32>
    %218 = arith.negf %217 : vector<8x128xf32>
    %219 = math.exp %218 : vector<8x128xf32>
    %cst_57 = arith.constant 1.000000e+00 : f32
    %220 = vector.broadcast %cst_57 : f32 to vector<8x128xf32>
    %221 = arith.addf %220, %219 : vector<8x128xf32>
    %222 = arith.divf %220, %221 : vector<8x128xf32>
    %223 = arith.mulf %222, %8 : vector<8x128xf32>
    %224 = arith.addf %223, %11 : vector<8x128xf32>
    %225 = vector.extract_strided_slice %224 {offsets = [0, 0], sizes = [8, 32], strides = [1, 1]} : vector<8x128xf32> to vector<8x32xf32>
    %226 = vector.extract_strided_slice %224 {offsets = [0, 32], sizes = [8, 32], strides = [1, 1]} : vector<8x128xf32> to vector<8x32xf32>
    %227 = vector.extract_strided_slice %224 {offsets = [0, 64], sizes = [8, 32], strides = [1, 1]} : vector<8x128xf32> to vector<8x32xf32>
    %228 = vector.extract_strided_slice %224 {offsets = [0, 96], sizes = [8, 32], strides = [1, 1]} : vector<8x128xf32> to vector<8x32xf32>
    %229 = arith.mulf %226, %169 : vector<8x32xf32>
    %230 = arith.mulf %225, %227 : vector<8x32xf32>
    %231 = arith.addf %229, %230 : vector<8x32xf32>
    %232 = math.tanh %231 : vector<8x32xf32>
    %233 = arith.mulf %228, %232 : vector<8x32xf32>
    %234 = arith.subf %233, %165 : vector<8x32xf32>
    %235 = vector.broadcast %212 : f32 to vector<8x32xf32>
    %236 = arith.mulf %235, %234 : vector<8x32xf32>
    %237 = arith.addf %165, %236 : vector<8x32xf32>
    %238 = arith.subf %231, %169 : vector<8x32xf32>
    %239 = vector.broadcast %212 : f32 to vector<8x32xf32>
    %240 = arith.mulf %239, %238 : vector<8x32xf32>
    %241 = arith.addf %169, %240 : vector<8x32xf32>
    %c3_i32 = arith.constant 3 : i32
    %c0_i32_58 = arith.constant 0 : i32
    %242 = arith.subi %c3_i32, %c0_i32_58 : i32
    %c0_i32_59 = arith.constant 0 : i32
    %243 = arith.cmpi sge, %242, %c0_i32_59 : i32
    %c8_i32_60 = arith.constant 8 : i32
    %244 = arith.cmpi slt, %242, %c8_i32_60 : i32
    %245 = arith.andi %243, %244 : i1
    %246 = arith.extui %245 : i1 to i32
    %247 = arith.sitofp %246 : i32 to f32
    %c7_i32_61 = arith.constant 7 : i32
    %248 = arith.minsi %242, %c7_i32_61 : i32
    %249 = arith.index_cast %248 : i32 to index
    %c0_62 = arith.constant 0 : index
    %c0_63 = arith.constant 0 : index
    %250 = vector.load %arg9[%249, %c0_62, %c0_63] : memref<8x8x128xf32, #tpu.memory_space<vmem>>, vector<1x8x128xf32>
    %251 = vector.shape_cast %250 : vector<1x8x128xf32> to vector<8x128xf32>
    %cst_64 = arith.constant dense<0.000000e+00> : vector<8x128xf32>
    %252 = tpu.matmul %202, %20, %cst_64 {dimension_numbers = #tpu.dot_dimension_numbers<[1], [0], [0], [1], [0, 0, 1, 1], [], []>} : vector<8x32xf32>, vector<32x128xf32>, vector<8x128xf32> -> vector<8x128xf32>
    %253 = arith.addf %251, %252 : vector<8x128xf32>
    %254 = arith.mulf %253, %8 : vector<8x128xf32>
    %255 = arith.negf %254 : vector<8x128xf32>
    %256 = math.exp %255 : vector<8x128xf32>
    %cst_65 = arith.constant 1.000000e+00 : f32
    %257 = vector.broadcast %cst_65 : f32 to vector<8x128xf32>
    %258 = arith.addf %257, %256 : vector<8x128xf32>
    %259 = arith.divf %257, %258 : vector<8x128xf32>
    %260 = arith.mulf %259, %8 : vector<8x128xf32>
    %261 = arith.addf %260, %11 : vector<8x128xf32>
    %262 = vector.extract_strided_slice %261 {offsets = [0, 0], sizes = [8, 32], strides = [1, 1]} : vector<8x128xf32> to vector<8x32xf32>
    %263 = vector.extract_strided_slice %261 {offsets = [0, 32], sizes = [8, 32], strides = [1, 1]} : vector<8x128xf32> to vector<8x32xf32>
    %264 = vector.extract_strided_slice %261 {offsets = [0, 64], sizes = [8, 32], strides = [1, 1]} : vector<8x128xf32> to vector<8x32xf32>
    %265 = vector.extract_strided_slice %261 {offsets = [0, 96], sizes = [8, 32], strides = [1, 1]} : vector<8x128xf32> to vector<8x32xf32>
    %266 = arith.mulf %263, %206 : vector<8x32xf32>
    %267 = arith.mulf %262, %264 : vector<8x32xf32>
    %268 = arith.addf %266, %267 : vector<8x32xf32>
    %269 = math.tanh %268 : vector<8x32xf32>
    %270 = arith.mulf %265, %269 : vector<8x32xf32>
    %271 = arith.subf %270, %202 : vector<8x32xf32>
    %272 = vector.broadcast %247 : f32 to vector<8x32xf32>
    %273 = arith.mulf %272, %271 : vector<8x32xf32>
    %274 = arith.addf %202, %273 : vector<8x32xf32>
    %275 = arith.subf %268, %206 : vector<8x32xf32>
    %276 = vector.broadcast %247 : f32 to vector<8x32xf32>
    %277 = arith.mulf %276, %275 : vector<8x32xf32>
    %278 = arith.addf %206, %277 : vector<8x32xf32>
    %c1_i32_66 = arith.constant 1 : i32
    %279 = arith.subi %c3_i32, %c1_i32_66 : i32
    %c0_i32_67 = arith.constant 0 : i32
    %280 = arith.cmpi sge, %279, %c0_i32_67 : i32
    %c8_i32_68 = arith.constant 8 : i32
    %281 = arith.cmpi slt, %279, %c8_i32_68 : i32
    %282 = arith.andi %280, %281 : i1
    %283 = arith.extui %282 : i1 to i32
    %284 = arith.sitofp %283 : i32 to f32
    %285 = tpu.concatenate %202, %237 in 1 : vector<8x32xf32>, vector<8x32xf32> -> vector<8x64xf32>
    %cst_69 = arith.constant dense<0.000000e+00> : vector<8x128xf32>
    %286 = tpu.matmul %285, %22, %cst_69 {dimension_numbers = #tpu.dot_dimension_numbers<[1], [0], [0], [1], [0, 0, 1, 1], [], []>} : vector<8x64xf32>, vector<64x128xf32>, vector<8x128xf32> -> vector<8x128xf32>
    %287 = vector.broadcast %24 : vector<1x128xf32> to vector<8x128xf32>
    %288 = arith.addf %286, %287 : vector<8x128xf32>
    %289 = arith.mulf %288, %8 : vector<8x128xf32>
    %290 = arith.negf %289 : vector<8x128xf32>
    %291 = math.exp %290 : vector<8x128xf32>
    %cst_70 = arith.constant 1.000000e+00 : f32
    %292 = vector.broadcast %cst_70 : f32 to vector<8x128xf32>
    %293 = arith.addf %292, %291 : vector<8x128xf32>
    %294 = arith.divf %292, %293 : vector<8x128xf32>
    %295 = arith.mulf %294, %8 : vector<8x128xf32>
    %296 = arith.addf %295, %11 : vector<8x128xf32>
    %297 = vector.extract_strided_slice %296 {offsets = [0, 0], sizes = [8, 32], strides = [1, 1]} : vector<8x128xf32> to vector<8x32xf32>
    %298 = vector.extract_strided_slice %296 {offsets = [0, 32], sizes = [8, 32], strides = [1, 1]} : vector<8x128xf32> to vector<8x32xf32>
    %299 = vector.extract_strided_slice %296 {offsets = [0, 64], sizes = [8, 32], strides = [1, 1]} : vector<8x128xf32> to vector<8x32xf32>
    %300 = vector.extract_strided_slice %296 {offsets = [0, 96], sizes = [8, 32], strides = [1, 1]} : vector<8x128xf32> to vector<8x32xf32>
    %301 = arith.mulf %298, %241 : vector<8x32xf32>
    %302 = arith.mulf %297, %299 : vector<8x32xf32>
    %303 = arith.addf %301, %302 : vector<8x32xf32>
    %304 = math.tanh %303 : vector<8x32xf32>
    %305 = arith.mulf %300, %304 : vector<8x32xf32>
    %306 = arith.subf %305, %237 : vector<8x32xf32>
    %307 = vector.broadcast %284 : f32 to vector<8x32xf32>
    %308 = arith.mulf %307, %306 : vector<8x32xf32>
    %309 = arith.addf %237, %308 : vector<8x32xf32>
    %310 = arith.subf %303, %241 : vector<8x32xf32>
    %311 = vector.broadcast %284 : f32 to vector<8x32xf32>
    %312 = arith.mulf %311, %310 : vector<8x32xf32>
    %313 = arith.addf %241, %312 : vector<8x32xf32>
    %c4_i32 = arith.constant 4 : i32
    %c0_i32_71 = arith.constant 0 : i32
    %314 = arith.subi %c4_i32, %c0_i32_71 : i32
    %c0_i32_72 = arith.constant 0 : i32
    %315 = arith.cmpi sge, %314, %c0_i32_72 : i32
    %c8_i32_73 = arith.constant 8 : i32
    %316 = arith.cmpi slt, %314, %c8_i32_73 : i32
    %317 = arith.andi %315, %316 : i1
    %318 = arith.extui %317 : i1 to i32
    %319 = arith.sitofp %318 : i32 to f32
    %c7_i32_74 = arith.constant 7 : i32
    %320 = arith.minsi %314, %c7_i32_74 : i32
    %321 = arith.index_cast %320 : i32 to index
    %c0_75 = arith.constant 0 : index
    %c0_76 = arith.constant 0 : index
    %322 = vector.load %arg9[%321, %c0_75, %c0_76] : memref<8x8x128xf32, #tpu.memory_space<vmem>>, vector<1x8x128xf32>
    %323 = vector.shape_cast %322 : vector<1x8x128xf32> to vector<8x128xf32>
    %cst_77 = arith.constant dense<0.000000e+00> : vector<8x128xf32>
    %324 = tpu.matmul %274, %20, %cst_77 {dimension_numbers = #tpu.dot_dimension_numbers<[1], [0], [0], [1], [0, 0, 1, 1], [], []>} : vector<8x32xf32>, vector<32x128xf32>, vector<8x128xf32> -> vector<8x128xf32>
    %325 = arith.addf %323, %324 : vector<8x128xf32>
    %326 = arith.mulf %325, %8 : vector<8x128xf32>
    %327 = arith.negf %326 : vector<8x128xf32>
    %328 = math.exp %327 : vector<8x128xf32>
    %cst_78 = arith.constant 1.000000e+00 : f32
    %329 = vector.broadcast %cst_78 : f32 to vector<8x128xf32>
    %330 = arith.addf %329, %328 : vector<8x128xf32>
    %331 = arith.divf %329, %330 : vector<8x128xf32>
    %332 = arith.mulf %331, %8 : vector<8x128xf32>
    %333 = arith.addf %332, %11 : vector<8x128xf32>
    %334 = vector.extract_strided_slice %333 {offsets = [0, 0], sizes = [8, 32], strides = [1, 1]} : vector<8x128xf32> to vector<8x32xf32>
    %335 = vector.extract_strided_slice %333 {offsets = [0, 32], sizes = [8, 32], strides = [1, 1]} : vector<8x128xf32> to vector<8x32xf32>
    %336 = vector.extract_strided_slice %333 {offsets = [0, 64], sizes = [8, 32], strides = [1, 1]} : vector<8x128xf32> to vector<8x32xf32>
    %337 = vector.extract_strided_slice %333 {offsets = [0, 96], sizes = [8, 32], strides = [1, 1]} : vector<8x128xf32> to vector<8x32xf32>
    %338 = arith.mulf %335, %278 : vector<8x32xf32>
    %339 = arith.mulf %334, %336 : vector<8x32xf32>
    %340 = arith.addf %338, %339 : vector<8x32xf32>
    %341 = math.tanh %340 : vector<8x32xf32>
    %342 = arith.mulf %337, %341 : vector<8x32xf32>
    %343 = arith.subf %342, %274 : vector<8x32xf32>
    %344 = vector.broadcast %319 : f32 to vector<8x32xf32>
    %345 = arith.mulf %344, %343 : vector<8x32xf32>
    %346 = arith.addf %274, %345 : vector<8x32xf32>
    %347 = arith.subf %340, %278 : vector<8x32xf32>
    %348 = vector.broadcast %319 : f32 to vector<8x32xf32>
    %349 = arith.mulf %348, %347 : vector<8x32xf32>
    %350 = arith.addf %278, %349 : vector<8x32xf32>
    %c1_i32_79 = arith.constant 1 : i32
    %351 = arith.subi %c4_i32, %c1_i32_79 : i32
    %c0_i32_80 = arith.constant 0 : i32
    %352 = arith.cmpi sge, %351, %c0_i32_80 : i32
    %c8_i32_81 = arith.constant 8 : i32
    %353 = arith.cmpi slt, %351, %c8_i32_81 : i32
    %354 = arith.andi %352, %353 : i1
    %355 = arith.extui %354 : i1 to i32
    %356 = arith.sitofp %355 : i32 to f32
    %357 = tpu.concatenate %274, %309 in 1 : vector<8x32xf32>, vector<8x32xf32> -> vector<8x64xf32>
    %cst_82 = arith.constant dense<0.000000e+00> : vector<8x128xf32>
    %358 = tpu.matmul %357, %22, %cst_82 {dimension_numbers = #tpu.dot_dimension_numbers<[1], [0], [0], [1], [0, 0, 1, 1], [], []>} : vector<8x64xf32>, vector<64x128xf32>, vector<8x128xf32> -> vector<8x128xf32>
    %359 = vector.broadcast %24 : vector<1x128xf32> to vector<8x128xf32>
    %360 = arith.addf %358, %359 : vector<8x128xf32>
    %361 = arith.mulf %360, %8 : vector<8x128xf32>
    %362 = arith.negf %361 : vector<8x128xf32>
    %363 = math.exp %362 : vector<8x128xf32>
    %cst_83 = arith.constant 1.000000e+00 : f32
    %364 = vector.broadcast %cst_83 : f32 to vector<8x128xf32>
    %365 = arith.addf %364, %363 : vector<8x128xf32>
    %366 = arith.divf %364, %365 : vector<8x128xf32>
    %367 = arith.mulf %366, %8 : vector<8x128xf32>
    %368 = arith.addf %367, %11 : vector<8x128xf32>
    %369 = vector.extract_strided_slice %368 {offsets = [0, 0], sizes = [8, 32], strides = [1, 1]} : vector<8x128xf32> to vector<8x32xf32>
    %370 = vector.extract_strided_slice %368 {offsets = [0, 32], sizes = [8, 32], strides = [1, 1]} : vector<8x128xf32> to vector<8x32xf32>
    %371 = vector.extract_strided_slice %368 {offsets = [0, 64], sizes = [8, 32], strides = [1, 1]} : vector<8x128xf32> to vector<8x32xf32>
    %372 = vector.extract_strided_slice %368 {offsets = [0, 96], sizes = [8, 32], strides = [1, 1]} : vector<8x128xf32> to vector<8x32xf32>
    %373 = arith.mulf %370, %313 : vector<8x32xf32>
    %374 = arith.mulf %369, %371 : vector<8x32xf32>
    %375 = arith.addf %373, %374 : vector<8x32xf32>
    %376 = math.tanh %375 : vector<8x32xf32>
    %377 = arith.mulf %372, %376 : vector<8x32xf32>
    %378 = arith.subf %377, %309 : vector<8x32xf32>
    %379 = vector.broadcast %356 : f32 to vector<8x32xf32>
    %380 = arith.mulf %379, %378 : vector<8x32xf32>
    %381 = arith.addf %309, %380 : vector<8x32xf32>
    %382 = arith.subf %375, %313 : vector<8x32xf32>
    %383 = vector.broadcast %356 : f32 to vector<8x32xf32>
    %384 = arith.mulf %383, %382 : vector<8x32xf32>
    %385 = arith.addf %313, %384 : vector<8x32xf32>
    %c5_i32 = arith.constant 5 : i32
    %c0_i32_84 = arith.constant 0 : i32
    %386 = arith.subi %c5_i32, %c0_i32_84 : i32
    %c0_i32_85 = arith.constant 0 : i32
    %387 = arith.cmpi sge, %386, %c0_i32_85 : i32
    %c8_i32_86 = arith.constant 8 : i32
    %388 = arith.cmpi slt, %386, %c8_i32_86 : i32
    %389 = arith.andi %387, %388 : i1
    %390 = arith.extui %389 : i1 to i32
    %391 = arith.sitofp %390 : i32 to f32
    %c7_i32_87 = arith.constant 7 : i32
    %392 = arith.minsi %386, %c7_i32_87 : i32
    %393 = arith.index_cast %392 : i32 to index
    %c0_88 = arith.constant 0 : index
    %c0_89 = arith.constant 0 : index
    %394 = vector.load %arg9[%393, %c0_88, %c0_89] : memref<8x8x128xf32, #tpu.memory_space<vmem>>, vector<1x8x128xf32>
    %395 = vector.shape_cast %394 : vector<1x8x128xf32> to vector<8x128xf32>
    %cst_90 = arith.constant dense<0.000000e+00> : vector<8x128xf32>
    %396 = tpu.matmul %346, %20, %cst_90 {dimension_numbers = #tpu.dot_dimension_numbers<[1], [0], [0], [1], [0, 0, 1, 1], [], []>} : vector<8x32xf32>, vector<32x128xf32>, vector<8x128xf32> -> vector<8x128xf32>
    %397 = arith.addf %395, %396 : vector<8x128xf32>
    %398 = arith.mulf %397, %8 : vector<8x128xf32>
    %399 = arith.negf %398 : vector<8x128xf32>
    %400 = math.exp %399 : vector<8x128xf32>
    %cst_91 = arith.constant 1.000000e+00 : f32
    %401 = vector.broadcast %cst_91 : f32 to vector<8x128xf32>
    %402 = arith.addf %401, %400 : vector<8x128xf32>
    %403 = arith.divf %401, %402 : vector<8x128xf32>
    %404 = arith.mulf %403, %8 : vector<8x128xf32>
    %405 = arith.addf %404, %11 : vector<8x128xf32>
    %406 = vector.extract_strided_slice %405 {offsets = [0, 0], sizes = [8, 32], strides = [1, 1]} : vector<8x128xf32> to vector<8x32xf32>
    %407 = vector.extract_strided_slice %405 {offsets = [0, 32], sizes = [8, 32], strides = [1, 1]} : vector<8x128xf32> to vector<8x32xf32>
    %408 = vector.extract_strided_slice %405 {offsets = [0, 64], sizes = [8, 32], strides = [1, 1]} : vector<8x128xf32> to vector<8x32xf32>
    %409 = vector.extract_strided_slice %405 {offsets = [0, 96], sizes = [8, 32], strides = [1, 1]} : vector<8x128xf32> to vector<8x32xf32>
    %410 = arith.mulf %407, %350 : vector<8x32xf32>
    %411 = arith.mulf %406, %408 : vector<8x32xf32>
    %412 = arith.addf %410, %411 : vector<8x32xf32>
    %413 = math.tanh %412 : vector<8x32xf32>
    %414 = arith.mulf %409, %413 : vector<8x32xf32>
    %415 = arith.subf %414, %346 : vector<8x32xf32>
    %416 = vector.broadcast %391 : f32 to vector<8x32xf32>
    %417 = arith.mulf %416, %415 : vector<8x32xf32>
    %418 = arith.addf %346, %417 : vector<8x32xf32>
    %419 = arith.subf %412, %350 : vector<8x32xf32>
    %420 = vector.broadcast %391 : f32 to vector<8x32xf32>
    %421 = arith.mulf %420, %419 : vector<8x32xf32>
    %422 = arith.addf %350, %421 : vector<8x32xf32>
    %c1_i32_92 = arith.constant 1 : i32
    %423 = arith.subi %c5_i32, %c1_i32_92 : i32
    %c0_i32_93 = arith.constant 0 : i32
    %424 = arith.cmpi sge, %423, %c0_i32_93 : i32
    %c8_i32_94 = arith.constant 8 : i32
    %425 = arith.cmpi slt, %423, %c8_i32_94 : i32
    %426 = arith.andi %424, %425 : i1
    %427 = arith.extui %426 : i1 to i32
    %428 = arith.sitofp %427 : i32 to f32
    %429 = tpu.concatenate %346, %381 in 1 : vector<8x32xf32>, vector<8x32xf32> -> vector<8x64xf32>
    %cst_95 = arith.constant dense<0.000000e+00> : vector<8x128xf32>
    %430 = tpu.matmul %429, %22, %cst_95 {dimension_numbers = #tpu.dot_dimension_numbers<[1], [0], [0], [1], [0, 0, 1, 1], [], []>} : vector<8x64xf32>, vector<64x128xf32>, vector<8x128xf32> -> vector<8x128xf32>
    %431 = vector.broadcast %24 : vector<1x128xf32> to vector<8x128xf32>
    %432 = arith.addf %430, %431 : vector<8x128xf32>
    %433 = arith.mulf %432, %8 : vector<8x128xf32>
    %434 = arith.negf %433 : vector<8x128xf32>
    %435 = math.exp %434 : vector<8x128xf32>
    %cst_96 = arith.constant 1.000000e+00 : f32
    %436 = vector.broadcast %cst_96 : f32 to vector<8x128xf32>
    %437 = arith.addf %436, %435 : vector<8x128xf32>
    %438 = arith.divf %436, %437 : vector<8x128xf32>
    %439 = arith.mulf %438, %8 : vector<8x128xf32>
    %440 = arith.addf %439, %11 : vector<8x128xf32>
    %441 = vector.extract_strided_slice %440 {offsets = [0, 0], sizes = [8, 32], strides = [1, 1]} : vector<8x128xf32> to vector<8x32xf32>
    %442 = vector.extract_strided_slice %440 {offsets = [0, 32], sizes = [8, 32], strides = [1, 1]} : vector<8x128xf32> to vector<8x32xf32>
    %443 = vector.extract_strided_slice %440 {offsets = [0, 64], sizes = [8, 32], strides = [1, 1]} : vector<8x128xf32> to vector<8x32xf32>
    %444 = vector.extract_strided_slice %440 {offsets = [0, 96], sizes = [8, 32], strides = [1, 1]} : vector<8x128xf32> to vector<8x32xf32>
    %445 = arith.mulf %442, %385 : vector<8x32xf32>
    %446 = arith.mulf %441, %443 : vector<8x32xf32>
    %447 = arith.addf %445, %446 : vector<8x32xf32>
    %448 = math.tanh %447 : vector<8x32xf32>
    %449 = arith.mulf %444, %448 : vector<8x32xf32>
    %450 = arith.subf %449, %381 : vector<8x32xf32>
    %451 = vector.broadcast %428 : f32 to vector<8x32xf32>
    %452 = arith.mulf %451, %450 : vector<8x32xf32>
    %453 = arith.addf %381, %452 : vector<8x32xf32>
    %454 = arith.subf %447, %385 : vector<8x32xf32>
    %455 = vector.broadcast %428 : f32 to vector<8x32xf32>
    %456 = arith.mulf %455, %454 : vector<8x32xf32>
    %457 = arith.addf %385, %456 : vector<8x32xf32>
    %c6_i32 = arith.constant 6 : i32
    %c0_i32_97 = arith.constant 0 : i32
    %458 = arith.subi %c6_i32, %c0_i32_97 : i32
    %c0_i32_98 = arith.constant 0 : i32
    %459 = arith.cmpi sge, %458, %c0_i32_98 : i32
    %c8_i32_99 = arith.constant 8 : i32
    %460 = arith.cmpi slt, %458, %c8_i32_99 : i32
    %461 = arith.andi %459, %460 : i1
    %462 = arith.extui %461 : i1 to i32
    %463 = arith.sitofp %462 : i32 to f32
    %c7_i32_100 = arith.constant 7 : i32
    %464 = arith.minsi %458, %c7_i32_100 : i32
    %465 = arith.index_cast %464 : i32 to index
    %c0_101 = arith.constant 0 : index
    %c0_102 = arith.constant 0 : index
    %466 = vector.load %arg9[%465, %c0_101, %c0_102] : memref<8x8x128xf32, #tpu.memory_space<vmem>>, vector<1x8x128xf32>
    %467 = vector.shape_cast %466 : vector<1x8x128xf32> to vector<8x128xf32>
    %cst_103 = arith.constant dense<0.000000e+00> : vector<8x128xf32>
    %468 = tpu.matmul %418, %20, %cst_103 {dimension_numbers = #tpu.dot_dimension_numbers<[1], [0], [0], [1], [0, 0, 1, 1], [], []>} : vector<8x32xf32>, vector<32x128xf32>, vector<8x128xf32> -> vector<8x128xf32>
    %469 = arith.addf %467, %468 : vector<8x128xf32>
    %470 = arith.mulf %469, %8 : vector<8x128xf32>
    %471 = arith.negf %470 : vector<8x128xf32>
    %472 = math.exp %471 : vector<8x128xf32>
    %cst_104 = arith.constant 1.000000e+00 : f32
    %473 = vector.broadcast %cst_104 : f32 to vector<8x128xf32>
    %474 = arith.addf %473, %472 : vector<8x128xf32>
    %475 = arith.divf %473, %474 : vector<8x128xf32>
    %476 = arith.mulf %475, %8 : vector<8x128xf32>
    %477 = arith.addf %476, %11 : vector<8x128xf32>
    %478 = vector.extract_strided_slice %477 {offsets = [0, 0], sizes = [8, 32], strides = [1, 1]} : vector<8x128xf32> to vector<8x32xf32>
    %479 = vector.extract_strided_slice %477 {offsets = [0, 32], sizes = [8, 32], strides = [1, 1]} : vector<8x128xf32> to vector<8x32xf32>
    %480 = vector.extract_strided_slice %477 {offsets = [0, 64], sizes = [8, 32], strides = [1, 1]} : vector<8x128xf32> to vector<8x32xf32>
    %481 = vector.extract_strided_slice %477 {offsets = [0, 96], sizes = [8, 32], strides = [1, 1]} : vector<8x128xf32> to vector<8x32xf32>
    %482 = arith.mulf %479, %422 : vector<8x32xf32>
    %483 = arith.mulf %478, %480 : vector<8x32xf32>
    %484 = arith.addf %482, %483 : vector<8x32xf32>
    %485 = math.tanh %484 : vector<8x32xf32>
    %486 = arith.mulf %481, %485 : vector<8x32xf32>
    %487 = arith.subf %486, %418 : vector<8x32xf32>
    %488 = vector.broadcast %463 : f32 to vector<8x32xf32>
    %489 = arith.mulf %488, %487 : vector<8x32xf32>
    %490 = arith.addf %418, %489 : vector<8x32xf32>
    %491 = arith.subf %484, %422 : vector<8x32xf32>
    %492 = vector.broadcast %463 : f32 to vector<8x32xf32>
    %493 = arith.mulf %492, %491 : vector<8x32xf32>
    %494 = arith.addf %422, %493 : vector<8x32xf32>
    %c1_i32_105 = arith.constant 1 : i32
    %495 = arith.subi %c6_i32, %c1_i32_105 : i32
    %c0_i32_106 = arith.constant 0 : i32
    %496 = arith.cmpi sge, %495, %c0_i32_106 : i32
    %c8_i32_107 = arith.constant 8 : i32
    %497 = arith.cmpi slt, %495, %c8_i32_107 : i32
    %498 = arith.andi %496, %497 : i1
    %499 = arith.extui %498 : i1 to i32
    %500 = arith.sitofp %499 : i32 to f32
    %501 = tpu.concatenate %418, %453 in 1 : vector<8x32xf32>, vector<8x32xf32> -> vector<8x64xf32>
    %cst_108 = arith.constant dense<0.000000e+00> : vector<8x128xf32>
    %502 = tpu.matmul %501, %22, %cst_108 {dimension_numbers = #tpu.dot_dimension_numbers<[1], [0], [0], [1], [0, 0, 1, 1], [], []>} : vector<8x64xf32>, vector<64x128xf32>, vector<8x128xf32> -> vector<8x128xf32>
    %503 = vector.broadcast %24 : vector<1x128xf32> to vector<8x128xf32>
    %504 = arith.addf %502, %503 : vector<8x128xf32>
    %505 = arith.mulf %504, %8 : vector<8x128xf32>
    %506 = arith.negf %505 : vector<8x128xf32>
    %507 = math.exp %506 : vector<8x128xf32>
    %cst_109 = arith.constant 1.000000e+00 : f32
    %508 = vector.broadcast %cst_109 : f32 to vector<8x128xf32>
    %509 = arith.addf %508, %507 : vector<8x128xf32>
    %510 = arith.divf %508, %509 : vector<8x128xf32>
    %511 = arith.mulf %510, %8 : vector<8x128xf32>
    %512 = arith.addf %511, %11 : vector<8x128xf32>
    %513 = vector.extract_strided_slice %512 {offsets = [0, 0], sizes = [8, 32], strides = [1, 1]} : vector<8x128xf32> to vector<8x32xf32>
    %514 = vector.extract_strided_slice %512 {offsets = [0, 32], sizes = [8, 32], strides = [1, 1]} : vector<8x128xf32> to vector<8x32xf32>
    %515 = vector.extract_strided_slice %512 {offsets = [0, 64], sizes = [8, 32], strides = [1, 1]} : vector<8x128xf32> to vector<8x32xf32>
    %516 = vector.extract_strided_slice %512 {offsets = [0, 96], sizes = [8, 32], strides = [1, 1]} : vector<8x128xf32> to vector<8x32xf32>
    %517 = arith.mulf %514, %457 : vector<8x32xf32>
    %518 = arith.mulf %513, %515 : vector<8x32xf32>
    %519 = arith.addf %517, %518 : vector<8x32xf32>
    %520 = math.tanh %519 : vector<8x32xf32>
    %521 = arith.mulf %516, %520 : vector<8x32xf32>
    %522 = arith.subf %521, %453 : vector<8x32xf32>
    %523 = vector.broadcast %500 : f32 to vector<8x32xf32>
    %524 = arith.mulf %523, %522 : vector<8x32xf32>
    %525 = arith.addf %453, %524 : vector<8x32xf32>
    %526 = arith.subf %519, %457 : vector<8x32xf32>
    %527 = vector.broadcast %500 : f32 to vector<8x32xf32>
    %528 = arith.mulf %527, %526 : vector<8x32xf32>
    %529 = arith.addf %457, %528 : vector<8x32xf32>
    %c7_i32_110 = arith.constant 7 : i32
    %c0_i32_111 = arith.constant 0 : i32
    %530 = arith.subi %c7_i32_110, %c0_i32_111 : i32
    %c0_i32_112 = arith.constant 0 : i32
    %531 = arith.cmpi sge, %530, %c0_i32_112 : i32
    %c8_i32_113 = arith.constant 8 : i32
    %532 = arith.cmpi slt, %530, %c8_i32_113 : i32
    %533 = arith.andi %531, %532 : i1
    %534 = arith.extui %533 : i1 to i32
    %535 = arith.sitofp %534 : i32 to f32
    %c7_i32_114 = arith.constant 7 : i32
    %536 = arith.minsi %530, %c7_i32_114 : i32
    %537 = arith.index_cast %536 : i32 to index
    %c0_115 = arith.constant 0 : index
    %c0_116 = arith.constant 0 : index
    %538 = vector.load %arg9[%537, %c0_115, %c0_116] : memref<8x8x128xf32, #tpu.memory_space<vmem>>, vector<1x8x128xf32>
    %539 = vector.shape_cast %538 : vector<1x8x128xf32> to vector<8x128xf32>
    %cst_117 = arith.constant dense<0.000000e+00> : vector<8x128xf32>
    %540 = tpu.matmul %490, %20, %cst_117 {dimension_numbers = #tpu.dot_dimension_numbers<[1], [0], [0], [1], [0, 0, 1, 1], [], []>} : vector<8x32xf32>, vector<32x128xf32>, vector<8x128xf32> -> vector<8x128xf32>
    %541 = arith.addf %539, %540 : vector<8x128xf32>
    %542 = arith.mulf %541, %8 : vector<8x128xf32>
    %543 = arith.negf %542 : vector<8x128xf32>
    %544 = math.exp %543 : vector<8x128xf32>
    %cst_118 = arith.constant 1.000000e+00 : f32
    %545 = vector.broadcast %cst_118 : f32 to vector<8x128xf32>
    %546 = arith.addf %545, %544 : vector<8x128xf32>
    %547 = arith.divf %545, %546 : vector<8x128xf32>
    %548 = arith.mulf %547, %8 : vector<8x128xf32>
    %549 = arith.addf %548, %11 : vector<8x128xf32>
    %550 = vector.extract_strided_slice %549 {offsets = [0, 0], sizes = [8, 32], strides = [1, 1]} : vector<8x128xf32> to vector<8x32xf32>
    %551 = vector.extract_strided_slice %549 {offsets = [0, 32], sizes = [8, 32], strides = [1, 1]} : vector<8x128xf32> to vector<8x32xf32>
    %552 = vector.extract_strided_slice %549 {offsets = [0, 64], sizes = [8, 32], strides = [1, 1]} : vector<8x128xf32> to vector<8x32xf32>
    %553 = vector.extract_strided_slice %549 {offsets = [0, 96], sizes = [8, 32], strides = [1, 1]} : vector<8x128xf32> to vector<8x32xf32>
    %554 = arith.mulf %551, %494 : vector<8x32xf32>
    %555 = arith.mulf %550, %552 : vector<8x32xf32>
    %556 = arith.addf %554, %555 : vector<8x32xf32>
    %557 = math.tanh %556 : vector<8x32xf32>
    %558 = arith.mulf %553, %557 : vector<8x32xf32>
    %559 = arith.subf %558, %490 : vector<8x32xf32>
    %560 = vector.broadcast %535 : f32 to vector<8x32xf32>
    %561 = arith.mulf %560, %559 : vector<8x32xf32>
    %562 = arith.addf %490, %561 : vector<8x32xf32>
    %563 = arith.subf %556, %494 : vector<8x32xf32>
    %564 = vector.broadcast %535 : f32 to vector<8x32xf32>
    %565 = arith.mulf %564, %563 : vector<8x32xf32>
    %566 = arith.addf %494, %565 : vector<8x32xf32>
    %c1_i32_119 = arith.constant 1 : i32
    %567 = arith.subi %c7_i32_110, %c1_i32_119 : i32
    %c0_i32_120 = arith.constant 0 : i32
    %568 = arith.cmpi sge, %567, %c0_i32_120 : i32
    %c8_i32_121 = arith.constant 8 : i32
    %569 = arith.cmpi slt, %567, %c8_i32_121 : i32
    %570 = arith.andi %568, %569 : i1
    %571 = arith.extui %570 : i1 to i32
    %572 = arith.sitofp %571 : i32 to f32
    %573 = tpu.concatenate %490, %525 in 1 : vector<8x32xf32>, vector<8x32xf32> -> vector<8x64xf32>
    %cst_122 = arith.constant dense<0.000000e+00> : vector<8x128xf32>
    %574 = tpu.matmul %573, %22, %cst_122 {dimension_numbers = #tpu.dot_dimension_numbers<[1], [0], [0], [1], [0, 0, 1, 1], [], []>} : vector<8x64xf32>, vector<64x128xf32>, vector<8x128xf32> -> vector<8x128xf32>
    %575 = vector.broadcast %24 : vector<1x128xf32> to vector<8x128xf32>
    %576 = arith.addf %574, %575 : vector<8x128xf32>
    %577 = arith.mulf %576, %8 : vector<8x128xf32>
    %578 = arith.negf %577 : vector<8x128xf32>
    %579 = math.exp %578 : vector<8x128xf32>
    %cst_123 = arith.constant 1.000000e+00 : f32
    %580 = vector.broadcast %cst_123 : f32 to vector<8x128xf32>
    %581 = arith.addf %580, %579 : vector<8x128xf32>
    %582 = arith.divf %580, %581 : vector<8x128xf32>
    %583 = arith.mulf %582, %8 : vector<8x128xf32>
    %584 = arith.addf %583, %11 : vector<8x128xf32>
    %585 = vector.extract_strided_slice %584 {offsets = [0, 0], sizes = [8, 32], strides = [1, 1]} : vector<8x128xf32> to vector<8x32xf32>
    %586 = vector.extract_strided_slice %584 {offsets = [0, 32], sizes = [8, 32], strides = [1, 1]} : vector<8x128xf32> to vector<8x32xf32>
    %587 = vector.extract_strided_slice %584 {offsets = [0, 64], sizes = [8, 32], strides = [1, 1]} : vector<8x128xf32> to vector<8x32xf32>
    %588 = vector.extract_strided_slice %584 {offsets = [0, 96], sizes = [8, 32], strides = [1, 1]} : vector<8x128xf32> to vector<8x32xf32>
    %589 = arith.mulf %586, %529 : vector<8x32xf32>
    %590 = arith.mulf %585, %587 : vector<8x32xf32>
    %591 = arith.addf %589, %590 : vector<8x32xf32>
    %592 = math.tanh %591 : vector<8x32xf32>
    %593 = arith.mulf %588, %592 : vector<8x32xf32>
    %594 = arith.subf %593, %525 : vector<8x32xf32>
    %595 = vector.broadcast %572 : f32 to vector<8x32xf32>
    %596 = arith.mulf %595, %594 : vector<8x32xf32>
    %597 = arith.addf %525, %596 : vector<8x32xf32>
    %598 = arith.subf %591, %529 : vector<8x32xf32>
    %599 = vector.broadcast %572 : f32 to vector<8x32xf32>
    %600 = arith.mulf %599, %598 : vector<8x32xf32>
    %601 = arith.addf %529, %600 : vector<8x32xf32>
    %c8_i32_124 = arith.constant 8 : i32
    %c0_i32_125 = arith.constant 0 : i32
    %602 = arith.subi %c8_i32_124, %c0_i32_125 : i32
    %c0_i32_126 = arith.constant 0 : i32
    %603 = arith.cmpi sge, %602, %c0_i32_126 : i32
    %c8_i32_127 = arith.constant 8 : i32
    %604 = arith.cmpi slt, %602, %c8_i32_127 : i32
    %605 = arith.andi %603, %604 : i1
    %606 = arith.extui %605 : i1 to i32
    %607 = arith.sitofp %606 : i32 to f32
    %c7_i32_128 = arith.constant 7 : i32
    %608 = arith.minsi %602, %c7_i32_128 : i32
    %609 = arith.index_cast %608 : i32 to index
    %c0_129 = arith.constant 0 : index
    %c0_130 = arith.constant 0 : index
    %610 = vector.load %arg9[%609, %c0_129, %c0_130] : memref<8x8x128xf32, #tpu.memory_space<vmem>>, vector<1x8x128xf32>
    %611 = vector.shape_cast %610 : vector<1x8x128xf32> to vector<8x128xf32>
    %cst_131 = arith.constant dense<0.000000e+00> : vector<8x128xf32>
    %612 = tpu.matmul %562, %20, %cst_131 {dimension_numbers = #tpu.dot_dimension_numbers<[1], [0], [0], [1], [0, 0, 1, 1], [], []>} : vector<8x32xf32>, vector<32x128xf32>, vector<8x128xf32> -> vector<8x128xf32>
    %613 = arith.addf %611, %612 : vector<8x128xf32>
    %614 = arith.mulf %613, %8 : vector<8x128xf32>
    %615 = arith.negf %614 : vector<8x128xf32>
    %616 = math.exp %615 : vector<8x128xf32>
    %cst_132 = arith.constant 1.000000e+00 : f32
    %617 = vector.broadcast %cst_132 : f32 to vector<8x128xf32>
    %618 = arith.addf %617, %616 : vector<8x128xf32>
    %619 = arith.divf %617, %618 : vector<8x128xf32>
    %620 = arith.mulf %619, %8 : vector<8x128xf32>
    %621 = arith.addf %620, %11 : vector<8x128xf32>
    %622 = vector.extract_strided_slice %621 {offsets = [0, 0], sizes = [8, 32], strides = [1, 1]} : vector<8x128xf32> to vector<8x32xf32>
    %623 = vector.extract_strided_slice %621 {offsets = [0, 32], sizes = [8, 32], strides = [1, 1]} : vector<8x128xf32> to vector<8x32xf32>
    %624 = vector.extract_strided_slice %621 {offsets = [0, 64], sizes = [8, 32], strides = [1, 1]} : vector<8x128xf32> to vector<8x32xf32>
    %625 = vector.extract_strided_slice %621 {offsets = [0, 96], sizes = [8, 32], strides = [1, 1]} : vector<8x128xf32> to vector<8x32xf32>
    %626 = arith.mulf %623, %566 : vector<8x32xf32>
    %627 = arith.mulf %622, %624 : vector<8x32xf32>
    %628 = arith.addf %626, %627 : vector<8x32xf32>
    %629 = math.tanh %628 : vector<8x32xf32>
    %630 = arith.mulf %625, %629 : vector<8x32xf32>
    %631 = arith.subf %630, %562 : vector<8x32xf32>
    %632 = vector.broadcast %607 : f32 to vector<8x32xf32>
    %633 = arith.mulf %632, %631 : vector<8x32xf32>
    %634 = arith.addf %562, %633 : vector<8x32xf32>
    %635 = arith.subf %628, %566 : vector<8x32xf32>
    %636 = vector.broadcast %607 : f32 to vector<8x32xf32>
    %637 = arith.mulf %636, %635 : vector<8x32xf32>
    %638 = arith.addf %566, %637 : vector<8x32xf32>
    %c1_i32_133 = arith.constant 1 : i32
    %639 = arith.subi %c8_i32_124, %c1_i32_133 : i32
    %c0_i32_134 = arith.constant 0 : i32
    %640 = arith.cmpi sge, %639, %c0_i32_134 : i32
    %c8_i32_135 = arith.constant 8 : i32
    %641 = arith.cmpi slt, %639, %c8_i32_135 : i32
    %642 = arith.andi %640, %641 : i1
    %643 = arith.extui %642 : i1 to i32
    %644 = arith.sitofp %643 : i32 to f32
    %645 = tpu.concatenate %562, %597 in 1 : vector<8x32xf32>, vector<8x32xf32> -> vector<8x64xf32>
    %cst_136 = arith.constant dense<0.000000e+00> : vector<8x128xf32>
    %646 = tpu.matmul %645, %22, %cst_136 {dimension_numbers = #tpu.dot_dimension_numbers<[1], [0], [0], [1], [0, 0, 1, 1], [], []>} : vector<8x64xf32>, vector<64x128xf32>, vector<8x128xf32> -> vector<8x128xf32>
    %647 = vector.broadcast %24 : vector<1x128xf32> to vector<8x128xf32>
    %648 = arith.addf %646, %647 : vector<8x128xf32>
    %649 = arith.mulf %648, %8 : vector<8x128xf32>
    %650 = arith.negf %649 : vector<8x128xf32>
    %651 = math.exp %650 : vector<8x128xf32>
    %cst_137 = arith.constant 1.000000e+00 : f32
    %652 = vector.broadcast %cst_137 : f32 to vector<8x128xf32>
    %653 = arith.addf %652, %651 : vector<8x128xf32>
    %654 = arith.divf %652, %653 : vector<8x128xf32>
    %655 = arith.mulf %654, %8 : vector<8x128xf32>
    %656 = arith.addf %655, %11 : vector<8x128xf32>
    %657 = vector.extract_strided_slice %656 {offsets = [0, 0], sizes = [8, 32], strides = [1, 1]} : vector<8x128xf32> to vector<8x32xf32>
    %658 = vector.extract_strided_slice %656 {offsets = [0, 32], sizes = [8, 32], strides = [1, 1]} : vector<8x128xf32> to vector<8x32xf32>
    %659 = vector.extract_strided_slice %656 {offsets = [0, 64], sizes = [8, 32], strides = [1, 1]} : vector<8x128xf32> to vector<8x32xf32>
    %660 = vector.extract_strided_slice %656 {offsets = [0, 96], sizes = [8, 32], strides = [1, 1]} : vector<8x128xf32> to vector<8x32xf32>
    %661 = arith.mulf %658, %601 : vector<8x32xf32>
    %662 = arith.mulf %657, %659 : vector<8x32xf32>
    %663 = arith.addf %661, %662 : vector<8x32xf32>
    %664 = math.tanh %663 : vector<8x32xf32>
    %665 = arith.mulf %660, %664 : vector<8x32xf32>
    %666 = arith.subf %665, %597 : vector<8x32xf32>
    %667 = vector.broadcast %644 : f32 to vector<8x32xf32>
    %668 = arith.mulf %667, %666 : vector<8x32xf32>
    %669 = arith.addf %597, %668 : vector<8x32xf32>
    %670 = arith.subf %663, %601 : vector<8x32xf32>
    %671 = vector.broadcast %644 : f32 to vector<8x32xf32>
    %672 = arith.mulf %671, %670 : vector<8x32xf32>
    %673 = arith.addf %601, %672 : vector<8x32xf32>
    %c9_i32 = arith.constant 9 : i32
    %c0_138 = arith.constant 0 : index
    %c0_139 = arith.constant 0 : index
    %674 = vector.load %arg6[%c0_138, %c0_139] : memref<32x128xf32, #tpu.memory_space<vmem>>, vector<32x128xf32>
    %cst_140 = arith.constant dense<0.000000e+00> : vector<8x128xf32>
    %675 = tpu.matmul %669, %674, %cst_140 {dimension_numbers = #tpu.dot_dimension_numbers<[1], [0], [0], [1], [0, 0, 1, 1], [], []>} : vector<8x32xf32>, vector<32x128xf32>, vector<8x128xf32> -> vector<8x128xf32>
    %c0_141 = arith.constant 0 : index
    %c0_142 = arith.constant 0 : index
    %676 = vector.load %arg7[%c0_141, %c0_142] : memref<1x128xf32, #tpu.memory_space<vmem>>, vector<1x128xf32>
    %677 = vector.broadcast %676 : vector<1x128xf32> to vector<8x128xf32>
    %678 = arith.addf %675, %677 : vector<8x128xf32>
    %c0_143 = arith.constant 0 : index
    %c0_144 = arith.constant 0 : index
    %679 = vector.load %arg8[%c0_143, %c0_144] : memref<8x128xf32, #tpu.memory_space<vmem>>, vector<8x128xf32>
    tpu.vector_store %arg8[%c0_143, %c0_144], %678 {strides = array<i32>} : memref<8x128xf32, #tpu.memory_space<vmem>>, vector<8x128xf32>,
    return
  }
}

</mosaic_0001>

<bundles_post_ra>
// kernel: forest_fire_lstm_forward.1
= control target key start
LH: loop header
LB: loop body
LE: loop exit
PB: predicated region body
PF: predicated region fallthrough
CT: control target
= control target key end

     0   :  { %13 = vsyncpa [#allocation4], 0  ;;  %s1589_s30 = smov [#allocation3]   ;;  %s1590_s10 = smov 128   ;;  %s2235_s0 = inlined_call_operand.vmem [shape: f32[64,4], index: 0, kind: input, shape index: {}]   ;;  %s2236_s1 = inlined_call_operand.vmem [shape: f32[4,128], index: 1, kind: input, shape index: {}]   ;;  %s2237_s2 = inlined_call_operand.vmem [shape: f32[1,128], index: 2, kind: input, shape index: {}]   ;;  %s2238_s3 = inlined_call_operand.vmem [shape: f32[32,128], index: 3, kind: input, shape index: {}]   ;;  %s2239_s4 = inlined_call_operand.vmem [shape: f32[1,64,128], index: 4, kind: input, shape index: {}]   ;;  %s2240_s5 = inlined_call_operand.vmem [shape: f32[1,1,128], index: 5, kind: input, shape index: {}]   ;;  %s2241_s6 = inlined_call_operand.hbm [shape: f32[32,128], index: 6, kind: input, shape index: {}]   ;;  %s2242_s7 = inlined_call_operand.vmem [shape: f32[1,128], index: 7, kind: input, shape index: {}]   ;;  %s2243_s8 = inlined_call_operand.vmem [shape: f32[8,128], index: 8, kind: output, shape index: {}]  }
   0x1   :  { %s30_s29 = sshll.u32 %s2241_s6, 4  ;;  %s32_s9 = sshll.u32 %s1589_s30, 4  ;;  %s31_s29 = int_to_ptr.hbm [resolvable:$true] %s30_s29  ;;  %s33_s9 = int_to_ptr.vmem [resolvable:$true] %s32_s9 }
   0x2   :  { %s1591_s11 = smov 8  }
   0x3   :  { %38 = dma.hbm_to_vmem [thread:$0]  %s31_s29, 512, %s33_s9, [#allocation4], %s1590_s10, %s1590_s10, %s1591_s11  }
   0x4   :  { %1587 = dma.done.wait [#allocation4], 512  }
   0x5   :  { %1588 = vsyncadd [#allocation4], 4294966784  ;;  %vm90_vm0 = vcmask 1043456   ;;  %v1647_v0 = vld [vmem:[%s2238_s3 + $0x18] sm:$0xff]  ;;  %v1657_v2 = vld [vmem:[%s2238_s3 + $0x10] sm:$0xff]  ;;  %vm65_vm1 = vcmask 31744   ;;  %v45_v15 = vlaneseq }
   0x6   :  { %v1652_v1 = vld [vmem:[%s2239_s4 + $0x38] sm:$0xff]  ;;  %173 = vmatpush.msra.mxu1 %v1647_v0  ;;  %v1664_v3 = vld [vmem:[%s2239_s4 + $0x30] sm:$0xff]  ;;  %v60_v4 = vld [vmem:[%s2236_s1] sm:$0xf]  ;;  %311 = vmatpush.msra.mxu3 %v1647_v0  ;;  %v1592_v11 = vmov 0.0   ;;  %v1593_v21 = vmov 1.0  }
   0x7   :  { %237 = vmatpush.msra.mxu2 %v1652_v1  ;;  %1403 = vmatpush.msk.msra.mxu0 %vm90_vm0, %v60_v4  ;;  %v1672_v5 = vld [vmem:[%s2238_s3 + $0x8] sm:$0xff]  ;;  %v52_v7 = vld [vmem:[%s2235_s0] sm:$0xff]  ;;  %v1702_v10 = vld [vmem:[%s2239_s4 + $0x18] sm:$0xff]  ;;  %v46_v16 = vand.u32 127, %v45_v15  ;;  %s1594_s18 = smov 64   ;;  %s1595_s19 = smov 32  }
   0x8   :  { %v1677_v6 = vld [vmem:[%s2239_s4 + $0x28] sm:$0xff]  ;;  %174 = vmatpush.msra.mxu1 %v1657_v2  ;;  %1404 = vmatmul.msk.f32.vlgmr.msra.gmra.mxu0 %vm65_vm1, %v52_v7  ;;  %v1689_v8 = vld [vmem:[%s2238_s3] sm:$0xff]  ;;  %v1712_v12 = vld [vmem:[%s2239_s4 + $0x10] sm:$0xff]  ;;  %vm157_vm13 = vcmask 261120   ;;  %vm226_vm14 = vcmask 523264  }
   0x9   :  { %238 = vmatpush.msra.mxu2 %v1664_v3  ;;  %v1694_v9 = vld [vmem:[%s2239_s4 + $0x20] sm:$0xff]  ;;  %312 = vmatpush.msra.mxu3 %v1657_v2  ;;  %v1720_v13 = vld [vmem:[%s2239_s4 + $0x8] sm:$0xff]  ;;  %vm47_vm2 = vcmp.ge.s32.totalorder %v46_v16, 64  ;;  %vm48_vm3 = vcmp.lt.s32.totalorder %v46_v16, 96 }
   0xa   :  { %175 = vmatpush.msra.mxu1 %v1672_v5  ;;  %1236 = vmatpush.msrb.mxu0 %v1652_v1  ;;  %v1729_v14 = vld [vmem:[%s2239_s4] sm:$0xff]  ;;  %vm1778_vm4 = vmand %vm47_vm2, %vm48_vm3 }
   0xb   :  { %239 = vmatpush.msra.mxu2 %v1677_v6  ;;  %313 = vmatpush.msra.mxu3 %v1672_v5  ;;  %v1776_v17 = vld [vmem:[%s2237_s2] ss:$0 sm:$0xff]  ;;  %v1785_v22 = vsel %vm1778_vm4, 2.0, %v1593_v21  ;;  %v1798_v45 = vsel %vm1778_vm4, -1.0, %v1592_v11 }
   0xc   :  { %176 = vmatpush.msra.mxu1 %v1689_v8  ;;  %1237 = vmatpush.msrb.mxu0 %v1664_v3  ;;  %v1791_v27 = vld [vmem:[%s2240_s5] ss:$0 sm:$0xff] }
   0xd   :  { %240 = vmatpush.msra.mxu2 %v1694_v9  ;;  %177 = vmatmul.f32.vlgmr.msra.gmra.mxu1 %v1592_v11 }
   0xe   :  { %314 = vmatpush.msra.mxu3 %v1689_v8  ;;  %380 = vmatpush.msrb.mxu1 %v1652_v1 }
   0xf   :  { %241 = vmatpush.msra.mxu2 %v1702_v10  ;;  %1238 = vmatpush.msrb.mxu0 %v1677_v6 }
  0x10   :  { %454 = vmatpush.msrb.mxu3 %v1647_v0  ;;  %381 = vmatpush.msrb.mxu1 %v1664_v3 }
  0x11   :  { %242 = vmatpush.msra.mxu2 %v1712_v12  ;;  %1239 = vmatpush.msrb.mxu0 %v1694_v9 }
  0x12   :  { %455 = vmatpush.msrb.mxu3 %v1657_v2  ;;  %382 = vmatpush.msrb.mxu1 %v1677_v6 }
  0x13   :  { %243 = vmatpush.msra.mxu2 %v1720_v13  ;;  %1240 = vmatpush.msrb.mxu0 %v1702_v10 }
  0x14   :  { %456 = vmatpush.msrb.mxu3 %v1672_v5  ;;  %383 = vmatpush.msrb.mxu1 %v1694_v9 }
  0x15   :  { %244 = vmatpush.msra.mxu2 %v1729_v14  ;;  %1241 = vmatpush.msrb.mxu0 %v1712_v12 }
  0x16   :  { %245 = vmatmul.f32.vlgmr.msra.gmra.mxu2 %v1592_v11  ;;  %457 = vmatpush.msrb.mxu3 %v1689_v8 }
  0x17   :  { %384 = vmatpush.msrb.mxu1 %v1702_v10  ;;  %523 = vmatpush.msrb.mxu2 %v1652_v1 }
  0x18   :  { %1242 = vmatpush.msrb.mxu0 %v1720_v13 }
  0x19   :  { %385 = vmatpush.msrb.mxu1 %v1712_v12  ;;  %524 = vmatpush.msrb.mxu2 %v1664_v3 }
  0x1a   :  { %1243 = vmatpush.msrb.mxu0 %v1729_v14 }
  0x1b   :  { %386 = vmatpush.msrb.mxu1 %v1720_v13  ;;  %525 = vmatpush.msrb.mxu2 %v1677_v6 }
  0x1d   :  { %387 = vmatpush.msrb.mxu1 %v1729_v14  ;;  %526 = vmatpush.msrb.mxu2 %v1694_v9 }
  0x1f   :  { %666 = vmatpush.msra.mxu1 %v1652_v1  ;;  %527 = vmatpush.msrb.mxu2 %v1702_v10 }
  0x21   :  { %667 = vmatpush.msra.mxu1 %v1664_v3  ;;  %528 = vmatpush.msrb.mxu2 %v1712_v12 }
  0x23   :  { %668 = vmatpush.msra.mxu1 %v1677_v6  ;;  %529 = vmatpush.msrb.mxu2 %v1720_v13 }
  0x25   :  { %669 = vmatpush.msra.mxu1 %v1694_v9  ;;  %530 = vmatpush.msrb.mxu2 %v1729_v14 }
  0x27   :  { %670 = vmatpush.msra.mxu1 %v1702_v10  ;;  %809 = vmatpush.msra.mxu2 %v1652_v1 }
  0x29   :  { %671 = vmatpush.msra.mxu1 %v1712_v12  ;;  %810 = vmatpush.msra.mxu2 %v1664_v3 }
  0x2b   :  { %672 = vmatpush.msra.mxu1 %v1720_v13  ;;  %811 = vmatpush.msra.mxu2 %v1677_v6 }
  0x2d   :  { %673 = vmatpush.msra.mxu1 %v1729_v14  ;;  %812 = vmatpush.msra.mxu2 %v1694_v9 }
  0x2f   :  { %813 = vmatpush.msra.mxu2 %v1702_v10 }
  0x31   :  { %814 = vmatpush.msra.mxu2 %v1712_v12 }
  0x33   :  { %815 = vmatpush.msra.mxu2 %v1720_v13 }
  0x35   :  { %816 = vmatpush.msra.mxu2 %v1729_v14 }
  0x85   :  { %v111_v18 = vpop.f32.mrf.mxu0 }
  0x86   :  { %v112_v20 = vadd.f32 %v1776_v17, %v111_v18 }
  0x8a   :  { %v178_v23 = vpop.f32.mrf.mxu1 }
  0x8b   :  { %v181_v24 = vadd.f32 %v178_v23, %v112_v20 }
  0x8d   :  { %v182_v25 = vmul.f32 %v181_v24, %v1785_v22 }
  0x8f   :  { %v1412_v26 = vmul.f32 -1.442695, %v182_v25 }
  0x91   :  { %1455 = vpow2.f32 %v1412_v26 }
  0x97   :  { %v1456_v28 = vpop.eup %1455 }
  0x98   :  { %v186_v29 = vadd.f32 1.0, %v1456_v28 }
  0x99   :  { %v246_v30 = vpop.f32.mrf.mxu2 }
  0x9a   :  { %v247_v31 = vadd.f32 %v1791_v27, %v246_v30  ;;  %1457 = vrcp.f32 %v186_v29  ;;  %v198_v37 = vand.u32 2147483648, %v186_v29  ;;  %v196_v40 = vand.u32 2147483647, %v186_v29 }
  0x9b   :  { %vm192_vm6 = vweird.f32 %v186_v29 }
  0x9c   :  { %v249_v32 = vmul.f32 %v247_v31, %v1785_v22  ;;  %v199_v43 = vor.u32 1.1754944e-38, %v198_v37  ;;  %vm197_vm8 = vcmp.eq.f32.partialorder %v196_v40, 8.507059e+37 }
  0x9e   :  { %v1413_v33 = vmul.f32 -1.442695, %v249_v32 }
  0xa0   :  { %1459 = vpow2.f32 %v1413_v33  ;;  %v1458_v34 = vpop.eup %1457 }
  0xa1   :  { %v188_v35 = vmul.f32 %v1458_v34, %v186_v29  ;;  %vm193_vm5 = vweird.f32 %v1458_v34  ;;  %v53_v29 = vld [vmem:[%s2235_s0 + $0x8] sm:$0xff] }
  0xa2   :  { %vm194_vm7 = vmor %vm192_vm6, %vm193_vm5  ;;  %1405 = vmatmul.msk.f32.gmra.mxu0 %vm65_vm1, %v53_v29 }
  0xa3   :  { %v189_v36 = vsub.f32 1.0, %v188_v35 }
  0xa5   :  { %v190_v39 = vmul.f32 %v1458_v34, %v189_v36 }
  0xa6   :  { %v1460_v38 = vpop.eup %1459 }
  0xa7   :  { %v253_v41 = vadd.f32 1.0, %v1460_v38  ;;  %v191_v42 = vadd.f32 %v1458_v34, %v190_v39 }
  0xa9   :  { %1461 = vrcp.f32 %v253_v41  ;;  %v195_v44 = vsel %vm194_vm7, %v1458_v34, %v191_v42  ;;  %v265_v52 = vand.u32 2147483648, %v253_v41  ;;  %v263_v54 = vand.u32 2147483647, %v253_v41 }
  0xaa   :  { %v200_v46 = vsel %vm197_vm8, %v199_v43, %v195_v44  ;;  %vm259_vm10 = vweird.f32 %v253_v41 }
  0xab   :  { %v202_v47 = vmul.f32 %v200_v46, %v1785_v22  ;;  %v266_v56 = vor.u32 1.1754944e-38, %v265_v52  ;;  %vm264_vm12 = vcmp.eq.f32.partialorder %v263_v54, 8.507059e+37 }
  0xad   :  { %v203_v48 = vadd.f32 %v202_v47, %v1798_v45 }
  0xaf   :  { %v1462_v49 = vpop.eup %1461  ;;  %206 = vrot.lane.b32.xlu0 %v203_v48, %s1594_s18  ;;  %v204_v7 = vmul.f32 0.0, %v203_v48 }
  0xb0   :  { %v255_v50 = vmul.f32 %v1462_v49, %v253_v41  ;;  %vm260_vm9 = vweird.f32 %v1462_v49 }
  0xb1   :  { %vm261_vm11 = vmor %vm259_vm10, %vm260_vm9 }
  0xb2   :  { %v256_v51 = vsub.f32 1.0, %v255_v50 }
  0xb4   :  { %v257_v53 = vmul.f32 %v1462_v49, %v256_v51 }
  0xb6   :  { %v258_v55 = vadd.f32 %v1462_v49, %v257_v53 }
  0xb8   :  { %v262_v57 = vsel %vm261_vm11, %v1462_v49, %v258_v55 }
  0xb9   :  { %v267_v58 = vsel %vm264_vm12, %v266_v56, %v262_v57 }
  0xba   :  { %v269_v59 = vmul.f32 %v267_v58, %v1785_v22 }
  0xbc   :  { %v270_v60 = vadd.f32 %v269_v59, %v1798_v45 }
  0xbe   :  { %273 = vrot.lane.b32.xlu0 %v270_v60, %s1594_s18  ;;  %v271_v18 = vmul.f32 0.0, %v270_v60 }
 0x11f   :  { %v114_v33 = vpop.f32.mrf.mxu0 }
 0x120   :  { %v115_v34 = vadd.f32 %v1776_v17, %v114_v33 }
 0x121   :  { %v207_v61 = vpop.permute.xlu0 %206 }
 0x122   :  { %v209_v62 = vmul.f32 %v207_v61, %v203_v48 }
 0x124   :  { %211 = vrot.lane.b32.xlu1 %v209_v62, %s1595_s19 }
 0x130   :  { %v274_v63 = vpop.permute.xlu0 %273 }
 0x131   :  { %v276_v4 = vmul.f32 %v274_v63, %v270_v60 }
 0x133   :  { %278 = vrot.lane.b32.xlu1 %v276_v4, %s1595_s19 }
 0x196   :  { %v212_v11 = vpop.permute.xlu1 %211 }
 0x197   :  { %v1808_v15 = vadd.f32 %v212_v11, %v204_v7 }
 0x199   :  { %1463 = vtanh.f32 %v1808_v15 }
 0x19f   :  { %v1464_v16 = vpop.eup %1463 }
 0x1a0   :  { %217 = vrot.lane.b32.xlu2 %v1464_v16, %s1594_s18 }
 0x1a5   :  { %v279_v19 = vpop.permute.xlu1 %278 }
 0x1a6   :  { %v1812_v20 = vadd.f32 %v279_v19, %v271_v18 }
 0x1a8   :  { %1465 = vtanh.f32 %v1812_v20 }
 0x1ae   :  { %v1466_v21 = vpop.eup %1465 }
 0x1af   :  { %284 = vrot.lane.b32.xlu2 %v1466_v21, %s1594_s18 }
 0x1fa   :  { %v218_v23 = vpop.permute.xlu2 %217 }
 0x1fb   :  { %v1816_v24 = vmul.f32 %v218_v23, %v203_v48 }
 0x1fd   :  { %295 = vrot.lane.b32.xlu0 %v1816_v24, %s1595_s19 }
 0x209   :  { %v285_v25 = vpop.permute.xlu2 %284 }
 0x20a   :  { %v287_v26 = vmul.f32 %v285_v25, %v270_v60 }
 0x20c   :  { %v1820_v28 = vmul.f32 0.0, %v287_v26 }
 0x20e   :  { %365 = vrot.lane.b32.xlu1 %v1820_v28, %s1594_s18 }
 0x26f   :  { %v296_v30 = vpop.permute.xlu0 %295 }
 0x270   :  { %1414 = vmatmul.msk.f32.vlgmr.msra.gmra.mxu3 %vm157_vm13, %v296_v30 }
 0x271   :  { %597 = vmatpush.msra.mxu3 %v1647_v0 }
 0x273   :  { %598 = vmatpush.msra.mxu3 %v1657_v2 }
 0x275   :  { %599 = vmatpush.msra.mxu3 %v1672_v5 }
 0x277   :  { %600 = vmatpush.msra.mxu3 %v1689_v8 }
 0x280   :  { %v366_v31 = vpop.permute.xlu1 %365 }
 0x281   :  { %v368_v32 = vsel %vm157_vm13, %v296_v30, %v366_v31 }
 0x282   :  { %1416 = vmatmul.msk.f32.vlgmr.msrb.gmra.mxu1 %vm226_vm14, %v368_v32 }
 0x283   :  { %952 = vmatpush.msrb.mxu1 %v1652_v1 }
 0x285   :  { %953 = vmatpush.msrb.mxu1 %v1664_v3 }
 0x287   :  { %954 = vmatpush.msrb.mxu1 %v1677_v6 }
 0x289   :  { %955 = vmatpush.msrb.mxu1 %v1694_v9 }
 0x28b   :  { %956 = vmatpush.msrb.mxu1 %v1702_v10 }
 0x28d   :  { %957 = vmatpush.msrb.mxu1 %v1712_v12 }
 0x28f   :  { %958 = vmatpush.msrb.mxu1 %v1720_v13 }
 0x291   :  { %959 = vmatpush.msrb.mxu1 %v1729_v14 }
 0x2f3   :  { %v316_v35 = vpop.f32.mrf.mxu3 }
 0x2f4   :  { %v319_v36 = vadd.f32 %v316_v35, %v115_v34  ;;  %v1860_v34 = vmul.f32 0.0, %v1812_v20 }
 0x2f6   :  { %v320_v37 = vmul.f32 %v319_v36, %v1785_v22 }
 0x2f8   :  { %v1415_v38 = vmul.f32 -1.442695, %v320_v37 }
 0x2fa   :  { %1467 = vpow2.f32 %v1415_v38 }
 0x2ff   :  { %v389_v39 = vpop.f32.mrf.mxu1 }
 0x300   :  { %v390_v40 = vadd.f32 %v1791_v27, %v389_v39  ;;  %v1468_v41 = vpop.eup %1467 }
 0x301   :  { %v324_v42 = vadd.f32 1.0, %v1468_v41 }
 0x302   :  { %v392_v43 = vmul.f32 %v390_v40, %v1785_v22 }
 0x303   :  { %1469 = vrcp.f32 %v324_v42  ;;  %v336_v51 = vand.u32 2147483648, %v324_v42  ;;  %v334_v53 = vand.u32 2147483647, %v324_v42  ;;  %vm330_vm0 = vweird.f32 %v324_v42 }
 0x304   :  { %v1417_v44 = vmul.f32 -1.442695, %v392_v43 }
 0x305   :  { %v337_v55 = vor.u32 1.1754944e-38, %v336_v51  ;;  %vm335_vm3 = vcmp.eq.f32.partialorder %v334_v53, 8.507059e+37 }
 0x306   :  { %1471 = vpow2.f32 %v1417_v44 }
 0x309   :  { %v1470_v46 = vpop.eup %1469 }
 0x30a   :  { %v326_v47 = vmul.f32 %v1470_v46, %v324_v42  ;;  %vm331_vm15 = vweird.f32 %v1470_v46 }
 0x30b   :  { %vm332_vm2 = vmor %vm330_vm0, %vm331_vm15 }
 0x30c   :  { %v1472_v48 = vpop.eup %1471  ;;  %v327_v49 = vsub.f32 1.0, %v326_v47 }
 0x30d   :  { %v396_v50 = vadd.f32 1.0, %v1472_v48  ;;  %v54_v48 = vld [vmem:[%s2235_s0 + $0x10] sm:$0xff] }
 0x30e   :  { %v328_v52 = vmul.f32 %v1470_v46, %v327_v49  ;;  %1406 = vmatmul.msk.f32.gmra.mxu0 %vm65_vm1, %v54_v48 }
 0x30f   :  { %1473 = vrcp.f32 %v396_v50  ;;  %v408_v63 = vand.u32 2147483648, %v396_v50  ;;  %v406_v7 = vand.u32 2147483647, %v396_v50  ;;  %vm402_vm5 = vweird.f32 %v396_v50 }
 0x310   :  { %v329_v54 = vadd.f32 %v1470_v46, %v328_v52 }
 0x311   :  { %v409_v16 = vor.u32 1.1754944e-38, %v408_v63  ;;  %vm407_vm7 = vcmp.eq.f32.partialorder %v406_v7, 8.507059e+37 }
 0x312   :  { %v333_v56 = vsel %vm332_vm2, %v1470_v46, %v329_v54 }
 0x313   :  { %v338_v57 = vsel %vm335_vm3, %v337_v55, %v333_v56 }
 0x314   :  { %v340_v59 = vmul.f32 %v338_v57, %v1785_v22 }
 0x315   :  { %v1474_v58 = vpop.eup %1473 }
 0x316   :  { %v398_v60 = vmul.f32 %v1474_v58, %v396_v50  ;;  %v341_v61 = vadd.f32 %v340_v59, %v1798_v45  ;;  %vm403_vm4 = vweird.f32 %v1474_v58 }
 0x317   :  { %vm404_vm6 = vmor %vm402_vm5, %vm403_vm4 }
 0x318   :  { %v399_v62 = vsub.f32 1.0, %v398_v60  ;;  %344 = vrot.lane.b32.xlu2 %v341_v61, %s1594_s18  ;;  %v342_v31 = vmul.f32 %v341_v61, %v1808_v15 }
 0x31a   :  { %v400_v4 = vmul.f32 %v1474_v58, %v399_v62 }
 0x31c   :  { %v401_v11 = vadd.f32 %v1474_v58, %v400_v4 }
 0x31e   :  { %v405_v18 = vsel %vm404_vm6, %v1474_v58, %v401_v11 }
 0x31f   :  { %v410_v19 = vsel %vm407_vm7, %v409_v16, %v405_v18 }
 0x320   :  { %v412_v21 = vmul.f32 %v410_v19, %v1785_v22 }
 0x322   :  { %v413_v23 = vadd.f32 %v412_v21, %v1798_v45 }
 0x324   :  { %416 = vrot.lane.b32.xlu0 %v413_v23, %s1594_s18  ;;  %v414_v36 = vmul.f32 %v413_v23, %v1860_v34 }
 0x372   :  { %v345_v25 = vpop.permute.xlu2 %344 }
 0x373   :  { %v347_v26 = vmul.f32 %v345_v25, %v341_v61 }
 0x375   :  { %349 = vrot.lane.b32.xlu1 %v347_v26, %s1595_s19 }
 0x38b   :  { %v117_v50 = vpop.f32.mrf.mxu0 }
 0x38c   :  { %v118_v51 = vadd.f32 %v1776_v17, %v117_v50 }
 0x396   :  { %v417_v29 = vpop.permute.xlu0 %416 }
 0x397   :  { %v419_v30 = vmul.f32 %v417_v29, %v413_v23 }
 0x399   :  { %421 = vrot.lane.b32.xlu2 %v419_v30, %s1595_s19 }
 0x3e7   :  { %v350_v32 = vpop.permute.xlu1 %349 }
 0x3e8   :  { %v1856_v33 = vadd.f32 %v350_v32, %v342_v31 }
 0x3ea   :  { %1475 = vtanh.f32 %v1856_v33  ;;  %v361_v50 = vsub.f32 %v1856_v33, %v1808_v15 }
 0x3f0   :  { %v1476_v35 = vpop.eup %1475 }
 0x3f1   :  { %355 = vrot.lane.b32.xlu0 %v1476_v35, %s1594_s18 }
 0x3f3   :  { %v422_v37 = vpop.permute.xlu2 %421 }
 0x3f4   :  { %v1864_v38 = vadd.f32 %v422_v37, %v414_v36 }
 0x3f6   :  { %1477 = vtanh.f32 %v1864_v38 }
 0x3fc   :  { %v1478_v39 = vpop.eup %1477 }
 0x3fd   :  { %427 = vrot.lane.b32.xlu1 %v1478_v39, %s1594_s18 }
 0x463   :  { %v356_v40 = vpop.permute.xlu0 %355 }
 0x464   :  { %v358_v41 = vmul.f32 %v356_v40, %v341_v61 }
 0x466   :  { %v359_v42 = vsub.f32 %v358_v41, %v1816_v24 }
 0x468   :  { %v1870_v20 = vadd.f32 %v359_v42, %v1816_v24 }
 0x46a   :  { %438 = vrot.lane.b32.xlu2 %v1870_v20, %s1595_s19 }
 0x46f   :  { %v428_v43 = vpop.permute.xlu1 %427 }
 0x470   :  { %v430_v44 = vmul.f32 %v428_v43, %v413_v23 }
 0x472   :  { %v431_v46 = vsub.f32 %v430_v44, %v1820_v28 }
 0x474   :  { %v1876_v47 = vadd.f32 %v431_v46, %v1820_v28 }
 0x476   :  { %508 = vrot.lane.b32.xlu0 %v1876_v47, %s1594_s18 }
 0x4c4   :  { %v439_v24 = vpop.permute.xlu2 %438 }
 0x4c5   :  { %1418 = vmatmul.msk.f32.vlgmr.msrb.gmra.mxu3 %vm157_vm13, %v439_v24 }
 0x4c6   :  { %740 = vmatpush.msrb.mxu3 %v1647_v0 }
 0x4c8   :  { %741 = vmatpush.msrb.mxu3 %v1657_v2 }
 0x4ca   :  { %742 = vmatpush.msrb.mxu3 %v1672_v5 }
 0x4cc   :  { %743 = vmatpush.msrb.mxu3 %v1689_v8 }
 0x4e8   :  { %v509_v28 = vpop.permute.xlu0 %508 }
 0x4e9   :  { %v511_v49 = vsel %vm157_vm13, %v439_v24, %v509_v28 }
 0x4ea   :  { %1420 = vmatmul.msk.f32.vlgmr.msrb.gmra.mxu2 %vm226_vm14, %v511_v49 }
 0x4eb   :  { %1095 = vmatpush.msrb.mxu2 %v1652_v1 }
 0x4ed   :  { %1096 = vmatpush.msrb.mxu2 %v1664_v3 }
 0x4ef   :  { %1097 = vmatpush.msrb.mxu2 %v1677_v6 }
 0x4f1   :  { %1098 = vmatpush.msrb.mxu2 %v1694_v9 }
 0x4f3   :  { %1099 = vmatpush.msrb.mxu2 %v1702_v10 }
 0x4f5   :  { %1100 = vmatpush.msrb.mxu2 %v1712_v12 }
 0x4f7   :  { %1101 = vmatpush.msrb.mxu2 %v1720_v13 }
 0x4f9   :  { %1102 = vmatpush.msrb.mxu2 %v1729_v14 }
 0x548   :  { %v459_v52 = vpop.f32.mrf.mxu3 }
 0x549   :  { %v462_v53 = vadd.f32 %v459_v52, %v118_v51  ;;  %v1914_v51 = vadd.f32 %v361_v50, %v1808_v15 }
 0x54b   :  { %v463_v54 = vmul.f32 %v462_v53, %v1785_v22 }
 0x54d   :  { %v1419_v55 = vmul.f32 -1.442695, %v463_v54 }
 0x54f   :  { %1479 = vpow2.f32 %v1419_v55  ;;  %v433_v55 = vsub.f32 %v1864_v38, %v1860_v34 }
 0x555   :  { %v1480_v56 = vpop.eup %1479 }
 0x556   :  { %v467_v57 = vadd.f32 1.0, %v1480_v56 }
 0x558   :  { %1481 = vrcp.f32 %v467_v57  ;;  %v479_v61 = vand.u32 2147483648, %v467_v57  ;;  %v477_v63 = vand.u32 2147483647, %v467_v57  ;;  %vm473_vm9 = vweird.f32 %v467_v57 }
 0x55a   :  { %v480_v7 = vor.u32 1.1754944e-38, %v479_v61  ;;  %vm478_vm11 = vcmp.eq.f32.partialorder %v477_v63, 8.507059e+37 }
 0x55e   :  { %v1482_v58 = vpop.eup %1481 }
 0x55f   :  { %v469_v59 = vmul.f32 %v1482_v58, %v467_v57  ;;  %vm474_vm8 = vweird.f32 %v1482_v58  ;;  %v1923_v57 = vadd.f32 %v433_v55, %v1860_v34 }
 0x560   :  { %vm475_vm10 = vmor %vm473_vm9, %vm474_vm8 }
 0x561   :  { %v470_v60 = vsub.f32 1.0, %v469_v59 }
 0x563   :  { %v471_v62 = vmul.f32 %v1482_v58, %v470_v60 }
 0x565   :  { %v472_v4 = vadd.f32 %v1482_v58, %v471_v62 }
 0x567   :  { %v476_v11 = vsel %vm475_vm10, %v1482_v58, %v472_v4 }
 0x568   :  { %v481_v16 = vsel %vm478_vm11, %v480_v7, %v476_v11  ;;  %v55_v11 = vld [vmem:[%s2235_s0 + $0x18] sm:$0xff] }
 0x569   :  { %v483_v18 = vmul.f32 %v481_v16, %v1785_v22  ;;  %1407 = vmatmul.msk.f32.gmra.mxu0 %vm65_vm1, %v55_v11 }
 0x56b   :  { %v484_v19 = vadd.f32 %v483_v18, %v1798_v45 }
 0x56d   :  { %v532_v21 = vpop.f32.mrf.mxu2  ;;  %487 = vrot.lane.b32.xlu1 %v484_v19, %s1594_s18  ;;  %v485_v52 = vmul.f32 %v484_v19, %v1914_v51 }
 0x56e   :  { %v533_v23 = vadd.f32 %v1791_v27, %v532_v21 }
 0x570   :  { %v535_v25 = vmul.f32 %v533_v23, %v1785_v22 }
 0x572   :  { %v1421_v26 = vmul.f32 -1.442695, %v535_v25 }
 0x574   :  { %1483 = vpow2.f32 %v1421_v26 }
 0x57a   :  { %v1484_v29 = vpop.eup %1483 }
 0x57b   :  { %v539_v30 = vadd.f32 1.0, %v1484_v29 }
 0x57d   :  { %1485 = vrcp.f32 %v539_v30  ;;  %v551_v36 = vand.u32 2147483648, %v539_v30  ;;  %v549_v39 = vand.u32 2147483647, %v539_v30  ;;  %vm545_vm15 = vweird.f32 %v539_v30 }
 0x57f   :  { %v552_v41 = vor.u32 1.1754944e-38, %v551_v36  ;;  %vm550_vm2 = vcmp.eq.f32.partialorder %v549_v39, 8.507059e+37 }
 0x583   :  { %v1486_v31 = vpop.eup %1485 }
 0x584   :  { %v541_v32 = vmul.f32 %v1486_v31, %v539_v30  ;;  %vm546_vm12 = vweird.f32 %v1486_v31 }
 0x585   :  { %vm547_vm0 = vmor %vm545_vm15, %vm546_vm12 }
 0x586   :  { %v542_v35 = vsub.f32 1.0, %v541_v32 }
 0x588   :  { %v543_v37 = vmul.f32 %v1486_v31, %v542_v35 }
 0x58a   :  { %v544_v40 = vadd.f32 %v1486_v31, %v543_v37 }
 0x58c   :  { %v548_v42 = vsel %vm547_vm0, %v1486_v31, %v544_v40 }
 0x58d   :  { %v553_v43 = vsel %vm550_vm2, %v552_v41, %v548_v42 }
 0x58e   :  { %v555_v44 = vmul.f32 %v553_v43, %v1785_v22 }
 0x590   :  { %v556_v46 = vadd.f32 %v555_v44, %v1798_v45 }
 0x592   :  { %559 = vrot.lane.b32.xlu2 %v556_v46, %s1594_s18  ;;  %v557_v33 = vmul.f32 %v556_v46, %v1923_v57 }
 0x5df   :  { %v488_v48 = vpop.permute.xlu1 %487 }
 0x5e0   :  { %v490_v24 = vmul.f32 %v488_v48, %v484_v19 }
 0x5e2   :  { %492 = vrot.lane.b32.xlu0 %v490_v24, %s1595_s19 }
 0x5e6   :  { %v120_v18 = vpop.f32.mrf.mxu0 }
 0x5ec   :  { %v560_v28 = vpop.permute.xlu2 %559 }
 0x5ed   :  { %v562_v49 = vmul.f32 %v560_v28, %v556_v46 }
 0x5ef   :  { %564 = vrot.lane.b32.xlu1 %v562_v49, %s1595_s19 }
 0x654   :  { %v493_v53 = vpop.permute.xlu0 %492 }
 0x655   :  { %v1917_v54 = vadd.f32 %v493_v53, %v485_v52 }
 0x657   :  { %1487 = vtanh.f32 %v1917_v54 }
 0x65d   :  { %v1488_v56 = vpop.eup %1487 }
 0x65e   :  { %498 = vrot.lane.b32.xlu2 %v1488_v56, %s1594_s18 }
 0x661   :  { %v565_v15 = vpop.permute.xlu1 %564 }
 0x662   :  { %v1927_v58 = vadd.f32 %v565_v15, %v557_v33 }
 0x664   :  { %1489 = vtanh.f32 %v1927_v58 }
 0x66a   :  { %v1490_v59 = vpop.eup %1489 }
 0x66b   :  { %570 = vrot.lane.b32.xlu0 %v1490_v59, %s1594_s18 }
 0x6b8   :  { %v499_v60 = vpop.permute.xlu2 %498 }
 0x6b9   :  { %v501_v61 = vmul.f32 %v499_v60, %v484_v19  ;;  %v121_v19 = vadd.f32 %v1776_v17, %v120_v18 }
 0x6bb   :  { %v502_v38 = vsub.f32 %v501_v61, %v1870_v20 }
 0x6bd   :  { %v1933_v62 = vadd.f32 %v502_v38, %v1870_v20  ;;  %v504_v38 = vsub.f32 %v1917_v54, %v1914_v51 }
 0x6bf   :  { %581 = vrot.lane.b32.xlu1 %v1933_v62, %s1595_s19 }
 0x6dd   :  { %v571_v34 = vpop.permute.xlu0 %570 }
 0x6de   :  { %v573_v63 = vmul.f32 %v571_v34, %v556_v46  ;;  %v1977_v34 = vadd.f32 %v504_v38, %v1914_v51 }
 0x6e0   :  { %v574_v4 = vsub.f32 %v573_v63, %v1876_v47 }
 0x6e2   :  { %v1939_v7 = vadd.f32 %v574_v4, %v1876_v47 }
 0x6e4   :  { %651 = vrot.lane.b32.xlu2 %v1939_v7, %s1594_s18 }
 0x731   :  { %v582_v20 = vpop.permute.xlu1 %581 }
 0x732   :  { %1422 = vmatmul.msk.f32.vlgmr.msra.gmra.mxu3 %vm157_vm13, %v582_v20 }
 0x733   :  { %883 = vmatpush.msra.mxu3 %v1647_v0 }
 0x735   :  { %884 = vmatpush.msra.mxu3 %v1657_v2 }
 0x737   :  { %885 = vmatpush.msra.mxu3 %v1672_v5 }
 0x739   :  { %886 = vmatpush.msra.mxu3 %v1689_v8 }
 0x73e   :  { %v652_v47 = vpop.permute.xlu2 %651 }
 0x73f   :  { %v654_v16 = vsel %vm157_vm13, %v582_v20, %v652_v47  ;;  %v576_v47 = vsub.f32 %v1927_v58, %v1923_v57 }
 0x740   :  { %1424 = vmatmul.msk.f32.vlgmr.msra.gmra.mxu1 %vm226_vm14, %v654_v16 }
 0x741   :  { %1311 = vmatpush.msra.mxu1 %v1652_v1  ;;  %v1987_v16 = vadd.f32 %v576_v47, %v1923_v57 }
 0x743   :  { %1312 = vmatpush.msra.mxu1 %v1664_v3 }
 0x745   :  { %1313 = vmatpush.msra.mxu1 %v1677_v6 }
 0x747   :  { %1314 = vmatpush.msra.mxu1 %v1694_v9 }
 0x749   :  { %1315 = vmatpush.msra.mxu1 %v1702_v10 }
 0x74b   :  { %1316 = vmatpush.msra.mxu1 %v1712_v12 }
 0x74d   :  { %1317 = vmatpush.msra.mxu1 %v1720_v13 }
 0x74f   :  { %1318 = vmatpush.msra.mxu1 %v1729_v14 }
 0x7b5   :  { %v602_v21 = vpop.f32.mrf.mxu3 }
 0x7b6   :  { %v605_v23 = vadd.f32 %v602_v21, %v121_v19 }
 0x7b8   :  { %v606_v1 = vmul.f32 %v605_v23, %v1785_v22 }
 0x7ba   :  { %v1423_v3 = vmul.f32 -1.442695, %v606_v1 }
 0x7bc   :  { %1491 = vpow2.f32 %v1423_v3 }
 0x7bd   :  { %v675_v6 = vpop.f32.mrf.mxu1 }
 0x7be   :  { %v676_v9 = vadd.f32 %v1791_v27, %v675_v6 }
 0x7c0   :  { %v678_v10 = vmul.f32 %v676_v9, %v1785_v22 }
 0x7c2   :  { %v1425_v25 = vmul.f32 -1.442695, %v678_v10  ;;  %v1492_v12 = vpop.eup %1491  ;;  %v56_v10 = vld [vmem:[%s2235_s0 + $0x20] sm:$0xff] }
 0x7c3   :  { %v610_v26 = vadd.f32 1.0, %v1492_v12  ;;  %1408 = vmatmul.msk.f32.gmra.mxu0 %vm65_vm1, %v56_v10 }
 0x7c4   :  { %1493 = vpow2.f32 %v1425_v25 }
 0x7c5   :  { %1495 = vrcp.f32 %v610_v26  ;;  %v622_v32 = vand.u32 2147483648, %v610_v26  ;;  %v620_v36 = vand.u32 2147483647, %v610_v26  ;;  %vm616_vm4 = vweird.f32 %v610_v26 }
 0x7c7   :  { %v623_v41 = vor.u32 1.1754944e-38, %v622_v32  ;;  %vm621_vm6 = vcmp.eq.f32.partialorder %v620_v36, 8.507059e+37 }
 0x7ca   :  { %v1494_v13 = vpop.eup %1493 }
 0x7cb   :  { %v682_v14 = vadd.f32 1.0, %v1494_v13  ;;  %v1496_v29 = vpop.eup %1495 }
 0x7cc   :  { %v612_v30 = vmul.f32 %v1496_v29, %v610_v26  ;;  %vm617_vm3 = vweird.f32 %v1496_v29 }
 0x7cd   :  { %1497 = vrcp.f32 %v682_v14  ;;  %vm618_vm5 = vmor %vm616_vm4, %vm617_vm3  ;;  %v694_v48 = vand.u32 2147483648, %v682_v14  ;;  %v692_v28 = vand.u32 2147483647, %v682_v14  ;;  %vm688_vm8 = vweird.f32 %v682_v14 }
 0x7ce   :  { %v613_v31 = vsub.f32 1.0, %v612_v30 }
 0x7cf   :  { %v695_v52 = vor.u32 1.1754944e-38, %v694_v48  ;;  %vm693_vm10 = vcmp.eq.f32.partialorder %v692_v28, 8.507059e+37 }
 0x7d0   :  { %v614_v35 = vmul.f32 %v1496_v29, %v613_v31 }
 0x7d2   :  { %v615_v39 = vadd.f32 %v1496_v29, %v614_v35 }
 0x7d3   :  { %v1498_v37 = vpop.eup %1497 }
 0x7d4   :  { %v684_v40 = vmul.f32 %v1498_v37, %v682_v14  ;;  %v619_v42 = vsel %vm618_vm5, %v1496_v29, %v615_v39  ;;  %vm689_vm7 = vweird.f32 %v1498_v37 }
 0x7d5   :  { %v624_v44 = vsel %vm621_vm6, %v623_v41, %v619_v42  ;;  %vm690_vm9 = vmor %vm688_vm8, %vm689_vm7 }
 0x7d6   :  { %v685_v43 = vsub.f32 1.0, %v684_v40  ;;  %v626_v46 = vmul.f32 %v624_v44, %v1785_v22 }
 0x7d8   :  { %v686_v24 = vmul.f32 %v1498_v37, %v685_v43  ;;  %v627_v49 = vadd.f32 %v626_v46, %v1798_v45 }
 0x7da   :  { %v687_v50 = vadd.f32 %v1498_v37, %v686_v24  ;;  %630 = vrot.lane.b32.xlu0 %v627_v49, %s1594_s18  ;;  %v628_v63 = vmul.f32 %v627_v49, %v1977_v34 }
 0x7dc   :  { %v691_v53 = vsel %vm690_vm9, %v1498_v37, %v687_v50 }
 0x7dd   :  { %v696_v55 = vsel %vm693_vm10, %v695_v52, %v691_v53 }
 0x7de   :  { %v698_v56 = vmul.f32 %v696_v55, %v1785_v22 }
 0x7e0   :  { %v699_v33 = vadd.f32 %v698_v56, %v1798_v45 }
 0x7e2   :  { %702 = vrot.lane.b32.xlu1 %v699_v33, %s1594_s18  ;;  %v700_v54 = vmul.f32 %v699_v33, %v1987_v16 }
 0x840   :  { %v123_v12 = vpop.f32.mrf.mxu0 }
 0x841   :  { %v124_v26 = vadd.f32 %v1776_v17, %v123_v12 }
 0x84c   :  { %v631_v15 = vpop.permute.xlu0 %630 }
 0x84d   :  { %v633_v59 = vmul.f32 %v631_v15, %v627_v49 }
 0x84f   :  { %635 = vrot.lane.b32.xlu2 %v633_v59, %s1595_s19 }
 0x854   :  { %v703_v60 = vpop.permute.xlu1 %702 }
 0x855   :  { %v705_v61 = vmul.f32 %v703_v60, %v699_v33 }
 0x857   :  { %707 = vrot.lane.b32.xlu0 %v705_v61, %s1595_s19 }
 0x8a9   :  { %v636_v4 = vpop.permute.xlu2 %635 }
 0x8aa   :  { %v1980_v11 = vadd.f32 %v636_v4, %v628_v63 }
 0x8ac   :  { %1499 = vtanh.f32 %v1980_v11 }
 0x8b2   :  { %v1500_v20 = vpop.eup %1499 }
 0x8b3   :  { %641 = vrot.lane.b32.xlu1 %v1500_v20, %s1594_s18 }
 0x8c9   :  { %v708_v51 = vpop.permute.xlu0 %707 }
 0x8ca   :  { %v1990_v18 = vadd.f32 %v708_v51, %v700_v54  ;;  %v647_v51 = vsub.f32 %v1980_v11, %v1977_v34 }
 0x8cc   :  { %1501 = vtanh.f32 %v1990_v18 }
 0x8d2   :  { %v1502_v19 = vpop.eup %1501 }
 0x8d3   :  { %713 = vrot.lane.b32.xlu2 %v1502_v19, %s1594_s18  ;;  %v2032_v19 = vadd.f32 %v647_v51, %v1977_v34 }
 0x925   :  { %v642_v21 = vpop.permute.xlu1 %641 }
 0x926   :  { %v644_v23 = vmul.f32 %v642_v21, %v627_v49 }
 0x928   :  { %v645_v1 = vsub.f32 %v644_v23, %v1933_v62 }
 0x92a   :  { %v1996_v3 = vadd.f32 %v645_v1, %v1933_v62  ;;  %v719_v1 = vsub.f32 %v1990_v18, %v1987_v16 }
 0x92c   :  { %724 = vrot.lane.b32.xlu0 %v1996_v3, %s1595_s19 }
 0x92d   :  { %v714_v57 = vpop.permute.xlu2 %713 }
 0x92e   :  { %v716_v58 = vmul.f32 %v714_v57, %v699_v33 }
 0x930   :  { %v717_v6 = vsub.f32 %v716_v58, %v1939_v7  ;;  %v2041_v58 = vadd.f32 %v719_v1, %v1987_v16 }
 0x932   :  { %v2002_v9 = vadd.f32 %v717_v6, %v1939_v7 }
 0x934   :  { %794 = vrot.lane.b32.xlu1 %v2002_v9, %s1594_s18 }
 0x99e   :  { %v725_v62 = vpop.permute.xlu0 %724 }
 0x99f   :  { %1426 = vmatmul.msk.f32.vlgmr.msrb.gmra.mxu3 %vm157_vm13, %v725_v62 }
 0x9a0   :  { %1026 = vmatpush.msrb.mxu3 %v1647_v0 }
 0x9a2   :  { %1027 = vmatpush.msrb.mxu3 %v1657_v2 }
 0x9a4   :  { %1028 = vmatpush.msrb.mxu3 %v1672_v5 }
 0x9a6   :  { %v795_v7 = vpop.permute.xlu1 %794  ;;  %1029 = vmatpush.msrb.mxu3 %v1689_v8 }
 0x9a7   :  { %v797_v25 = vsel %vm157_vm13, %v725_v62, %v795_v7 }
 0x9a8   :  { %1428 = vmatmul.msk.f32.vlgmr.msra.gmra.mxu2 %vm226_vm14, %v797_v25 }
 0xa22   :  { %v745_v13 = vpop.f32.mrf.mxu3 }
 0xa23   :  { %v748_v14 = vadd.f32 %v745_v13, %v124_v26 }
 0xa25   :  { %v749_v29 = vmul.f32 %v748_v14, %v1785_v22 }
 0xa27   :  { %v1427_v30 = vmul.f32 -1.442695, %v749_v29  ;;  %v57_v29 = vld [vmem:[%s2235_s0 + $0x28] sm:$0xff] }
 0xa28   :  { %1409 = vmatmul.msk.f32.gmra.mxu0 %vm65_vm1, %v57_v29 }
 0xa29   :  { %1503 = vpow2.f32 %v1427_v30  ;;  %v1557_v30 = vld [vmem:[%s2238_s3 + $0x18] sm:$0xff] }
 0xa2b   :  { %v818_v0 = vpop.f32.mrf.mxu2 }
 0xa2c   :  { %v819_v2 = vadd.f32 %v1791_v27, %v818_v0  ;;  %v1559_v0 = vld [vmem:[%s2238_s3 + $0x8] sm:$0xff] }
 0xa2e   :  { %v821_v5 = vmul.f32 %v819_v2, %v1785_v22  ;;  %v1560_v2 = vld [vmem:[%s2238_s3] sm:$0xff] }
 0xa2f   :  { %v1504_v31 = vpop.eup %1503 }
 0xa30   :  { %v1429_v32 = vmul.f32 -1.442695, %v821_v5  ;;  %v753_v35 = vadd.f32 1.0, %v1504_v31 }
 0xa32   :  { %1505 = vpow2.f32 %v1429_v32  ;;  %v765_v41 = vand.u32 2147483648, %v753_v35  ;;  %v763_v43 = vand.u32 2147483647, %v753_v35  ;;  %vm759_vm12 = vweird.f32 %v753_v35 }
 0xa33   :  { %1507 = vrcp.f32 %v753_v35 }
 0xa34   :  { %v766_v48 = vor.u32 1.1754944e-38, %v765_v41  ;;  %vm764_vm0 = vcmp.eq.f32.partialorder %v763_v43, 8.507059e+37 }
 0xa38   :  { %v1506_v8 = vpop.eup %1505 }
 0xa39   :  { %v1508_v36 = vpop.eup %1507  ;;  %v825_v37 = vadd.f32 1.0, %v1506_v8 }
 0xa3a   :  { %v755_v39 = vmul.f32 %v1508_v36, %v753_v35  ;;  %vm760_vm11 = vweird.f32 %v1508_v36 }
 0xa3b   :  { %1509 = vrcp.f32 %v825_v37  ;;  %vm761_vm15 = vmor %vm759_vm12, %vm760_vm11  ;;  %v837_v53 = vand.u32 2147483648, %v825_v37  ;;  %v835_v33 = vand.u32 2147483647, %v825_v37  ;;  %vm831_vm3 = vweird.f32 %v825_v37 }
 0xa3c   :  { %v756_v40 = vsub.f32 1.0, %v755_v39 }
 0xa3d   :  { %v838_v59 = vor.u32 1.1754944e-38, %v837_v53  ;;  %vm836_vm5 = vcmp.eq.f32.partialorder %v835_v33, 8.507059e+37 }
 0xa3e   :  { %v757_v42 = vmul.f32 %v1508_v36, %v756_v40 }
 0xa40   :  { %v758_v44 = vadd.f32 %v1508_v36, %v757_v42 }
 0xa41   :  { %v1510_v46 = vpop.eup %1509 }
 0xa42   :  { %v827_v24 = vmul.f32 %v1510_v46, %v825_v37  ;;  %v762_v28 = vsel %vm761_vm15, %v1508_v36, %v758_v44  ;;  %vm832_vm2 = vweird.f32 %v1510_v46 }
 0xa43   :  { %v767_v49 = vsel %vm764_vm0, %v766_v48, %v762_v28  ;;  %vm833_vm4 = vmor %vm831_vm3, %vm832_vm2 }
 0xa44   :  { %v828_v50 = vsub.f32 1.0, %v827_v24  ;;  %v769_v52 = vmul.f32 %v767_v49, %v1785_v22 }
 0xa46   :  { %v770_v55 = vadd.f32 %v769_v52, %v1798_v45  ;;  %v829_v56 = vmul.f32 %v1510_v46, %v828_v50 }
 0xa48   :  { %773 = vrot.lane.b32.xlu2 %v770_v55, %s1594_s18  ;;  %v830_v15 = vadd.f32 %v1510_v46, %v829_v56  ;;  %v771_v21 = vmul.f32 %v770_v55, %v2032_v19 }
 0xa4a   :  { %v834_v60 = vsel %vm833_vm4, %v1510_v46, %v830_v15 }
 0xa4b   :  { %v839_v61 = vsel %vm836_vm5, %v838_v59, %v834_v60 }
 0xa4c   :  { %v841_v38 = vmul.f32 %v839_v61, %v1785_v22 }
 0xa4e   :  { %v842_v63 = vadd.f32 %v841_v38, %v1798_v45 }
 0xa50   :  { %845 = vrot.lane.b32.xlu0 %v842_v63, %s1594_s18  ;;  %v843_v6 = vmul.f32 %v842_v63, %v2041_v58 }
 0xaa2   :  { %v774_v4 = vpop.permute.xlu2 %773 }
 0xaa3   :  { %v776_v20 = vmul.f32 %v774_v4, %v770_v55 }
 0xaa5   :  { %778 = vrot.lane.b32.xlu1 %v776_v20, %s1595_s19  ;;  %v126_v32 = vpop.f32.mrf.mxu0 }
 0xaa6   :  { %v127_v35 = vadd.f32 %v1776_v17, %v126_v32 }
 0xac2   :  { %v846_v47 = vpop.permute.xlu0 %845 }
 0xac3   :  { %v848_v54 = vmul.f32 %v846_v47, %v842_v63 }
 0xac5   :  { %850 = vrot.lane.b32.xlu2 %v848_v54, %s1595_s19 }
 0xb17   :  { %v779_v23 = vpop.permute.xlu1 %778 }
 0xb18   :  { %v2037_v57 = vadd.f32 %v779_v23, %v771_v21 }
 0xb1a   :  { %1511 = vtanh.f32 %v2037_v57 }
 0xb1f   :  { %v851_v10 = vpop.permute.xlu2 %850 }
 0xb20   :  { %v1512_v11 = vpop.eup %1511  ;;  %v2044_v62 = vadd.f32 %v851_v10, %v843_v6 }
 0xb21   :  { %784 = vrot.lane.b32.xlu0 %v1512_v11, %s1594_s18 }
 0xb22   :  { %1513 = vtanh.f32 %v2044_v62 }
 0xb28   :  { %v1514_v34 = vpop.eup %1513 }
 0xb29   :  { %856 = vrot.lane.b32.xlu1 %v1514_v34, %s1594_s18 }
 0xb93   :  { %v785_v18 = vpop.permute.xlu0 %784 }
 0xb94   :  { %v787_v7 = vmul.f32 %v785_v18, %v770_v55  ;;  %v790_v18 = vsub.f32 %v2037_v57, %v2032_v19 }
 0xb96   :  { %v788_v25 = vsub.f32 %v787_v7, %v1996_v3  ;;  %v862_v7 = vsub.f32 %v2044_v62, %v2041_v58 }
 0xb98   :  { %v2051_v16 = vadd.f32 %v788_v25, %v1996_v3  ;;  %v2097_v25 = vadd.f32 %v790_v18, %v2032_v19 }
 0xb9a   :  { %867 = vrot.lane.b32.xlu2 %v2051_v16, %s1595_s19 }
 0xb9b   :  { %v857_v12 = vpop.permute.xlu1 %856 }
 0xb9c   :  { %v859_v26 = vmul.f32 %v857_v12, %v842_v63 }
 0xb9e   :  { %v860_v13 = vsub.f32 %v859_v26, %v2002_v9  ;;  %v2101_v26 = vadd.f32 %v862_v7, %v2041_v58 }
 0xba0   :  { %v2057_v14 = vadd.f32 %v860_v13, %v2002_v9  ;;  %v1558_v9 = vld [vmem:[%s2238_s3 + $0x10] sm:$0xff] }
 0xba2   :  { %937 = vrot.lane.b32.xlu0 %v2057_v14, %s1594_s18 }
 0xbf4   :  { %v868_v3 = vpop.permute.xlu2 %867 }
 0xbf5   :  { %1430 = vmatmul.msk.f32.vlgmr.msra.gmra.mxu3 %vm157_vm13, %v868_v3 }
 0xbf6   :  { %1169 = vmatpush.msra.mxu3 %v1557_v30 }
 0xbf8   :  { %1170 = vmatpush.msra.mxu3 %v1558_v9 }
 0xbfa   :  { %1171 = vmatpush.msra.mxu3 %v1559_v0 }
 0xbfc   :  { %1172 = vmatpush.msra.mxu3 %v1560_v2 }
 0xc14   :  { %v938_v5 = vpop.permute.xlu0 %937 }
 0xc15   :  { %v940_v31 = vsel %vm157_vm13, %v868_v3, %v938_v5 }
 0xc16   :  { %1432 = vmatmul.msk.f32.vlgmr.msrb.gmra.mxu1 %vm226_vm14, %v940_v31 }
 0xc78   :  { %v888_v8 = vpop.f32.mrf.mxu3 }
 0xc79   :  { %v891_v36 = vadd.f32 %v888_v8, %v127_v35  ;;  %v58_v8 = vld [vmem:[%s2235_s0 + $0x30] sm:$0xff] }
 0xc7a   :  { %1410 = vmatmul.msk.f32.gmra.mxu0 %vm65_vm1, %v58_v8 }
 0xc7b   :  { %v892_v37 = vmul.f32 %v891_v36, %v1785_v22 }
 0xc7d   :  { %v1431_v39 = vmul.f32 -1.442695, %v892_v37 }
 0xc7f   :  { %1515 = vpow2.f32 %v1431_v39 }
 0xc85   :  { %v1516_v40 = vpop.eup %1515 }
 0xc86   :  { %v896_v41 = vadd.f32 1.0, %v1516_v40 }
 0xc88   :  { %1517 = vrcp.f32 %v896_v41  ;;  %v908_v46 = vand.u32 2147483648, %v896_v41  ;;  %v906_v28 = vand.u32 2147483647, %v896_v41  ;;  %vm902_vm7 = vweird.f32 %v896_v41 }
 0xc8a   :  { %v909_v52 = vor.u32 1.1754944e-38, %v908_v46  ;;  %vm907_vm9 = vcmp.eq.f32.partialorder %v906_v28, 8.507059e+37 }
 0xc8e   :  { %v1518_v42 = vpop.eup %1517 }
 0xc8f   :  { %v898_v43 = vmul.f32 %v1518_v42, %v896_v41  ;;  %vm903_vm6 = vweird.f32 %v1518_v42 }
 0xc90   :  { %vm904_vm8 = vmor %vm902_vm7, %vm903_vm6 }
 0xc91   :  { %v899_v44 = vsub.f32 1.0, %v898_v43 }
 0xc93   :  { %v961_v48 = vpop.f32.mrf.mxu1  ;;  %v900_v24 = vmul.f32 %v1518_v42, %v899_v44 }
 0xc94   :  { %v962_v49 = vadd.f32 %v1791_v27, %v961_v48  ;;  %v2141_v48 = vld [vmem:[%s2240_s5] ss:$0 sm:$0xff] }
 0xc95   :  { %v901_v17 = vadd.f32 %v1518_v42, %v900_v24 }
 0xc96   :  { %v964_v50 = vmul.f32 %v962_v49, %v1785_v22 }
 0xc97   :  { %v905_v53 = vsel %vm904_vm8, %v1518_v42, %v901_v17 }
 0xc98   :  { %v1433_v55 = vmul.f32 -1.442695, %v964_v50  ;;  %v910_v56 = vsel %vm907_vm9, %v909_v52, %v905_v53 }
 0xc99   :  { %v912_v33 = vmul.f32 %v910_v56, %v1785_v22 }
 0xc9a   :  { %1519 = vpow2.f32 %v1433_v55 }
 0xc9b   :  { %v913_v15 = vadd.f32 %v912_v33, %v1798_v45 }
 0xc9d   :  { %916 = vrot.lane.b32.xlu1 %v913_v15, %s1594_s18  ;;  %v914_v12 = vmul.f32 %v913_v15, %v2097_v25 }
 0xca0   :  { %v1520_v59 = vpop.eup %1519 }
 0xca1   :  { %v968_v60 = vadd.f32 1.0, %v1520_v59 }
 0xca3   :  { %1521 = vrcp.f32 %v968_v60  ;;  %v980_v63 = vand.u32 2147483648, %v968_v60  ;;  %v978_v20 = vand.u32 2147483647, %v968_v60  ;;  %vm974_vm11 = vweird.f32 %v968_v60 }
 0xca5   :  { %v981_v54 = vor.u32 1.1754944e-38, %v980_v63  ;;  %vm979_vm15 = vcmp.eq.f32.partialorder %v978_v20, 8.507059e+37 }
 0xca9   :  { %v1522_v27 = vpop.eup %1521 }
 0xcaa   :  { %v970_v61 = vmul.f32 %v1522_v27, %v968_v60  ;;  %vm975_vm10 = vweird.f32 %v1522_v27 }
 0xcab   :  { %vm976_vm12 = vmor %vm974_vm11, %vm975_vm10 }
 0xcac   :  { %v971_v38 = vsub.f32 1.0, %v970_v61 }
 0xcae   :  { %v972_v4 = vmul.f32 %v1522_v27, %v971_v38 }
 0xcb0   :  { %v973_v47 = vadd.f32 %v1522_v27, %v972_v4 }
 0xcb2   :  { %v977_v51 = vsel %vm976_vm12, %v1522_v27, %v973_v47 }
 0xcb3   :  { %v982_v21 = vsel %vm979_vm15, %v981_v54, %v977_v51 }
 0xcb4   :  { %v984_v23 = vmul.f32 %v982_v21, %v1785_v22 }
 0xcb6   :  { %v985_v1 = vadd.f32 %v984_v23, %v1798_v45 }
 0xcb8   :  { %988 = vrot.lane.b32.xlu2 %v985_v1, %s1594_s18  ;;  %v986_v3 = vmul.f32 %v985_v1, %v2101_v26 }
 0xcf7   :  { %v129_v39 = vpop.f32.mrf.mxu0 }
 0xd0f   :  { %v917_v6 = vpop.permute.xlu1 %916 }
 0xd10   :  { %v919_v10 = vmul.f32 %v917_v6, %v913_v15 }
 0xd12   :  { %v989_v11 = vpop.permute.xlu2 %988  ;;  %921 = vrot.lane.b32.xlu0 %v919_v10, %s1595_s19 }
 0xd13   :  { %v991_v34 = vmul.f32 %v989_v11, %v985_v1 }
 0xd15   :  { %993 = vrot.lane.b32.xlu1 %v991_v34, %s1595_s19 }
 0xd84   :  { %v922_v13 = vpop.permute.xlu0 %921 }
 0xd85   :  { %v2103_v29 = vadd.f32 %v922_v13, %v914_v12 }
 0xd87   :  { %1523 = vtanh.f32 %v2103_v29  ;;  %v994_v30 = vpop.permute.xlu1 %993 }
 0xd88   :  { %v2107_v57 = vadd.f32 %v994_v30, %v986_v3 }
 0xd8a   :  { %1525 = vtanh.f32 %v2107_v57 }
 0xd8d   :  { %v1524_v62 = vpop.eup %1523 }
 0xd8e   :  { %927 = vrot.lane.b32.xlu2 %v1524_v62, %s1594_s18  ;;  %v933_v62 = vsub.f32 %v2103_v29, %v2097_v25 }
 0xd90   :  { %v1526_v19 = vpop.eup %1525 }
 0xd91   :  { %999 = vrot.lane.b32.xlu0 %v1526_v19, %s1594_s18  ;;  %v2156_v19 = vadd.f32 %v933_v62, %v2097_v25 }
 0xde8   :  { %v928_v58 = vpop.permute.xlu2 %927 }
 0xde9   :  { %v930_v9 = vmul.f32 %v928_v58, %v913_v15 }
 0xdeb   :  { %v931_v0 = vsub.f32 %v930_v9, %v2051_v16 }
 0xded   :  { %v2114_v2 = vadd.f32 %v931_v0, %v2051_v16 }
 0xdef   :  { %1010 = vrot.lane.b32.xlu1 %v2114_v2, %s1595_s19 }
 0xe03   :  { %v1000_v5 = vpop.permute.xlu0 %999 }
 0xe04   :  { %v1002_v31 = vmul.f32 %v1000_v5, %v985_v1 }
 0xe06   :  { %v1003_v32 = vsub.f32 %v1002_v31, %v2057_v14  ;;  %v1005_v31 = vsub.f32 %v2107_v57, %v2101_v26 }
 0xe08   :  { %v2120_v35 = vadd.f32 %v1003_v32, %v2057_v14  ;;  %v2134_v14 = vld [vmem:[%s2237_s2] ss:$0 sm:$0xff]  ;;  %v2166_v32 = vadd.f32 %v1005_v31, %v2101_v26 }
 0xe09   :  { %v130_v40 = vadd.f32 %v2134_v14, %v129_v39 }
 0xe0a   :  { %1080 = vrot.lane.b32.xlu2 %v2120_v35, %s1594_s18 }
 0xe61   :  { %v1011_v16 = vpop.permute.xlu1 %1010 }
 0xe62   :  { %1434 = vmatmul.msk.f32.vlgmr.msrb.gmra.mxu3 %vm157_vm13, %v1011_v16 }
 0xe64   :  { %v1081_v36 = vpop.permute.xlu2 %1080 }
 0xe65   :  { %v1083_v37 = vsel %vm157_vm13, %v1011_v16, %v1081_v36  ;;  %v59_v36 = vld [vmem:[%s2235_s0 + $0x38] sm:$0xff] }
 0xe66   :  { %1436 = vmatmul.msk.f32.vlgmr.msrb.gmra.mxu2 %vm226_vm14, %v1083_v37  ;;  %1411 = vmatmul.msk.f32.gmra.mxu0 %vm65_vm1, %v59_v36 }
 0xee5   :  { %v1031_v41 = vpop.f32.mrf.mxu3 }
 0xee6   :  { %v1034_v42 = vadd.f32 %v1031_v41, %v130_v40 }
 0xee8   :  { %v1035_v43 = vmul.f32 %v1034_v42, %v1785_v22 }
 0xee9   :  { %v1104_v44 = vpop.f32.mrf.mxu2 }
 0xeea   :  { %v1435_v46 = vmul.f32 -1.442695, %v1035_v43  ;;  %v1105_v24 = vadd.f32 %v2141_v48, %v1104_v44 }
 0xeec   :  { %1527 = vpow2.f32 %v1435_v46  ;;  %v1107_v28 = vmul.f32 %v1105_v24, %v1785_v22 }
 0xeee   :  { %v1437_v49 = vmul.f32 -1.442695, %v1107_v28 }
 0xef0   :  { %1529 = vpow2.f32 %v1437_v49 }
 0xef2   :  { %v1528_v17 = vpop.eup %1527 }
 0xef3   :  { %v1039_v50 = vadd.f32 1.0, %v1528_v17 }
 0xef5   :  { %1531 = vrcp.f32 %v1039_v50  ;;  %v1049_v59 = vand.u32 2147483647, %v1039_v50  ;;  %v1051_v60 = vand.u32 2147483648, %v1039_v50  ;;  %vm1045_vm2 = vweird.f32 %v1039_v50 }
 0xef6   :  { %v1530_v52 = vpop.eup %1529 }
 0xef7   :  { %v1111_v53 = vadd.f32 1.0, %v1530_v52  ;;  %vm1050_vm4 = vcmp.eq.f32.partialorder %v1049_v59, 8.507059e+37  ;;  %v1052_v4 = vor.u32 1.1754944e-38, %v1051_v60 }
 0xef9   :  { %1533 = vrcp.f32 %v1111_v53  ;;  %v1123_v20 = vand.u32 2147483648, %v1111_v53  ;;  %v1121_v51 = vand.u32 2147483647, %v1111_v53  ;;  %vm1117_vm6 = vweird.f32 %v1111_v53 }
 0xefb   :  { %v1532_v55 = vpop.eup %1531  ;;  %v1124_v6 = vor.u32 1.1754944e-38, %v1123_v20  ;;  %vm1122_vm8 = vcmp.eq.f32.partialorder %v1121_v51, 8.507059e+37 }
 0xefc   :  { %v1041_v56 = vmul.f32 %v1532_v55, %v1039_v50  ;;  %vm1046_vm0 = vweird.f32 %v1532_v55 }
 0xefd   :  { %vm1047_vm3 = vmor %vm1045_vm2, %vm1046_vm0 }
 0xefe   :  { %v1042_v33 = vsub.f32 1.0, %v1041_v56 }
 0xeff   :  { %v1534_v15 = vpop.eup %1533 }
 0xf00   :  { %v1113_v27 = vmul.f32 %v1534_v15, %v1111_v53  ;;  %v1043_v61 = vmul.f32 %v1532_v55, %v1042_v33  ;;  %vm1118_vm5 = vweird.f32 %v1534_v15 }
 0xf01   :  { %vm1119_vm7 = vmor %vm1117_vm6, %vm1118_vm5 }
 0xf02   :  { %v1114_v38 = vsub.f32 1.0, %v1113_v27  ;;  %v1044_v63 = vadd.f32 %v1532_v55, %v1043_v61 }
 0xf04   :  { %v1048_v47 = vsel %vm1047_vm3, %v1532_v55, %v1044_v63  ;;  %v1115_v54 = vmul.f32 %v1534_v15, %v1114_v38 }
 0xf05   :  { %v1053_v21 = vsel %vm1050_vm4, %v1052_v4, %v1048_v47 }
 0xf06   :  { %v1055_v23 = vmul.f32 %v1053_v21, %v1785_v22  ;;  %v1116_v1 = vadd.f32 %v1534_v15, %v1115_v54 }
 0xf08   :  { %v1056_v10 = vadd.f32 %v1055_v23, %v1798_v45  ;;  %v1120_v11 = vsel %vm1119_vm7, %v1534_v15, %v1116_v1 }
 0xf09   :  { %v1125_v34 = vsel %vm1122_vm8, %v1124_v6, %v1120_v11 }
 0xf0a   :  { %1059 = vrot.lane.b32.xlu0 %v1056_v10, %s1594_s18  ;;  %v1127_v18 = vmul.f32 %v1125_v34, %v1785_v22  ;;  %v1057_v58 = vmul.f32 %v1056_v10, %v2156_v19 }
 0xf0c   :  { %v1128_v7 = vadd.f32 %v1127_v18, %v1798_v45 }
 0xf0e   :  { %1131 = vrot.lane.b32.xlu1 %v1128_v7, %s1594_s18  ;;  %v1129_v29 = vmul.f32 %v1128_v7, %v2166_v32 }
 0xf7c   :  { %v1060_v12 = vpop.permute.xlu0 %1059 }
 0xf7d   :  { %v1062_v13 = vmul.f32 %v1060_v12, %v1056_v10 }
 0xf7f   :  { %1064 = vrot.lane.b32.xlu2 %v1062_v13, %s1595_s19 }
 0xf80   :  { %v1132_v3 = vpop.permute.xlu1 %1131 }
 0xf81   :  { %v1134_v30 = vmul.f32 %v1132_v3, %v1128_v7 }
 0xf83   :  { %1136 = vrot.lane.b32.xlu0 %v1134_v30, %s1595_s19 }
 0xfd9   :  { %v1065_v9 = vpop.permute.xlu2 %1064 }
 0xfda   :  { %v2159_v0 = vadd.f32 %v1065_v9, %v1057_v58 }
 0xfdc   :  { %1535 = vtanh.f32 %v2159_v0 }
 0xfe2   :  { %v1536_v5 = vpop.eup %1535 }
 0xfe3   :  { %1070 = vrot.lane.b32.xlu1 %v1536_v5, %s1594_s18 }
 0xff5   :  { %v1137_v25 = vpop.permute.xlu0 %1136 }
 0xff6   :  { %v2169_v8 = vadd.f32 %v1137_v25, %v1129_v29  ;;  %v1076_v25 = vsub.f32 %v2159_v0, %v2156_v19 }
 0xff8   :  { %1537 = vtanh.f32 %v2169_v8  ;;  %v1148_v29 = vsub.f32 %v2169_v8, %v2166_v32  ;;  %v1077_v36 = vadd.f32 %v1076_v25, %v2156_v19 }
 0xffe   :  { %v1538_v16 = vpop.eup %1537 }
 0xfff   :  { %1142 = vrot.lane.b32.xlu2 %v1538_v16, %s1594_s18  ;;  %v1149_v16 = vadd.f32 %v1148_v29, %v2166_v32 }
0x1055   :  { %v1071_v57 = vpop.permute.xlu1 %1070 }
0x1056   :  { %v1073_v37 = vmul.f32 %v1071_v57, %v1056_v10 }
0x1058   :  { %v1074_v26 = vsub.f32 %v1073_v37, %v2114_v2 }
0x1059   :  { %v1143_v39 = vpop.permute.xlu2 %1142 }
0x105a   :  { %v1145_v40 = vmul.f32 %v1143_v39, %v1128_v7  ;;  %v2179_v41 = vadd.f32 %v1074_v26, %v2114_v2  ;;  %v132_v2 = vpop.f32.mrf.mxu0 }
0x105b   :  { %v133_v28 = vadd.f32 %v2134_v14, %v132_v2 }
0x105c   :  { %v1146_v42 = vsub.f32 %v1145_v40, %v2120_v35  ;;  %1153 = vrot.lane.b32.xlu0 %v2179_v41, %s1595_s19 }
0x105e   :  { %v2185_v43 = vadd.f32 %v1146_v42, %v2120_v35 }
0x1060   :  { %1221 = vrot.lane.b32.xlu1 %v2185_v43, %s1594_s18 }
0x10ce   :  { %v1154_v44 = vpop.permute.xlu0 %1153 }
0x10cf   :  { %1438 = vmatmul.msk.f32.vlgmr.msra.gmra.mxu3 %vm157_vm13, %v1154_v44 }
0x10d2   :  { %v1222_v46 = vpop.permute.xlu1 %1221 }
0x10d3   :  { %v1224_v24 = vsel %vm157_vm13, %v1154_v44, %v1222_v46 }
0x10d4   :  { %1440 = vmatmul.msk.f32.vlgmr.msrb.gmra.mxu0 %vm226_vm14, %v1224_v24 }
0x1151   :  { %v1245_v49 = vpop.f32.mrf.mxu0 }
0x1152   :  { %v1246_v17 = vadd.f32 %v2141_v48, %v1245_v49  ;;  %v1174_v50 = vpop.f32.mrf.mxu3 }
0x1153   :  { %v1177_v35 = vadd.f32 %v1174_v50, %v133_v28 }
0x1154   :  { %v1248_v52 = vmul.f32 %v1246_v17, %v1785_v22 }
0x1155   :  { %v1178_v53 = vmul.f32 %v1177_v35, %v1785_v22 }
0x1156   :  { %v1441_v55 = vmul.f32 -1.442695, %v1248_v52 }
0x1157   :  { %v1439_v56 = vmul.f32 -1.442695, %v1178_v53 }
0x1158   :  { %1539 = vpow2.f32 %v1441_v55 }
0x1159   :  { %1541 = vpow2.f32 %v1439_v56 }
0x115e   :  { %v1540_v33 = vpop.eup %1539 }
0x115f   :  { %v1542_v15 = vpop.eup %1541  ;;  %v1252_v59 = vadd.f32 1.0, %v1540_v33 }
0x1160   :  { %v1182_v60 = vadd.f32 1.0, %v1542_v15 }
0x1161   :  { %1543 = vrcp.f32 %v1252_v59  ;;  %v1264_v20 = vand.u32 2147483648, %v1252_v59  ;;  %v1262_v54 = vand.u32 2147483647, %v1252_v59  ;;  %vm1258_vm10 = vweird.f32 %v1252_v59 }
0x1162   :  { %1545 = vrcp.f32 %v1182_v60  ;;  %v1194_v51 = vand.u32 2147483648, %v1182_v60  ;;  %v1192_v23 = vand.u32 2147483647, %v1182_v60  ;;  %vm1188_vm12 = vweird.f32 %v1182_v60 }
0x1163   :  { %v1265_v6 = vor.u32 1.1754944e-38, %v1264_v20  ;;  %vm1263_vm15 = vcmp.eq.f32.partialorder %v1262_v54, 8.507059e+37 }
0x1164   :  { %v1195_v34 = vor.u32 1.1754944e-38, %v1194_v51  ;;  %vm1193_vm2 = vcmp.eq.f32.partialorder %v1192_v23, 8.507059e+37 }
0x1167   :  { %v1544_v14 = vpop.eup %1543 }
0x1168   :  { %v1546_v27 = vpop.eup %1545  ;;  %v1254_v61 = vmul.f32 %v1544_v14, %v1252_v59  ;;  %vm1259_vm1 = vweird.f32 %v1544_v14 }
0x1169   :  { %v1184_v38 = vmul.f32 %v1546_v27, %v1182_v60  ;;  %vm1189_vm9 = vweird.f32 %v1546_v27  ;;  %vm1260_vm11 = vmor %vm1258_vm10, %vm1259_vm1 }
0x116a   :  { %v1255_v63 = vsub.f32 1.0, %v1254_v61  ;;  %vm1190_vm0 = vmor %vm1188_vm12, %vm1189_vm9 }
0x116b   :  { %v1185_v4 = vsub.f32 1.0, %v1184_v38 }
0x116c   :  { %v1256_v47 = vmul.f32 %v1544_v14, %v1255_v63 }
0x116d   :  { %v1186_v21 = vmul.f32 %v1546_v27, %v1185_v4 }
0x116e   :  { %v1257_v1 = vadd.f32 %v1544_v14, %v1256_v47 }
0x116f   :  { %v1187_v10 = vadd.f32 %v1546_v27, %v1186_v21 }
0x1170   :  { %v1261_v11 = vsel %vm1260_vm11, %v1544_v14, %v1257_v1 }
0x1171   :  { %v1266_v18 = vsel %vm1263_vm15, %v1265_v6, %v1261_v11  ;;  %v1191_v7 = vsel %vm1190_vm0, %v1546_v27, %v1187_v10  ;;  %v1367_v11 = vld [vmem:[#allocation3 + $0x18] sm:$0xff] }
0x1172   :  { %v1268_v12 = vmul.f32 %v1266_v18, %v1785_v22  ;;  %v1196_v13 = vsel %vm1193_vm2, %v1195_v34, %v1191_v7  ;;  %v1366_v34 = vld [vmem:[#allocation3 + $0x10] sm:$0xff]  ;;  %1389 = vmatpush.msrb.mxu3 %v1367_v11 }
0x1173   :  { %v1198_v3 = vmul.f32 %v1196_v13, %v1785_v22 }
0x1174   :  { %v1269_v30 = vadd.f32 %v1268_v12, %v1798_v45  ;;  %1390 = vmatpush.msrb.mxu3 %v1366_v34 }
0x1175   :  { %v1199_v62 = vadd.f32 %v1198_v3, %v1798_v45 }
0x1176   :  { %1272 = vrot.lane.b32.xlu0 %v1269_v30, %s1594_s18  ;;  %v1270_v57 = vmul.f32 %v1269_v30, %v1149_v16 }
0x1177   :  { %1202 = vrot.lane.b32.xlu2 %v1199_v62, %s1594_s18  ;;  %v1200_v26 = vmul.f32 %v1199_v62, %v1077_v36 }
0x11d1   :  { %v1203_v58 = vpop.permute.xlu2 %1202 }
0x11d2   :  { %v1205_v9 = vmul.f32 %v1203_v58, %v1199_v62 }
0x11d4   :  { %1207 = vrot.lane.b32.xlu1 %v1205_v9, %s1595_s19 }
0x11e8   :  { %v1273_v5 = vpop.permute.xlu0 %1272 }
0x11e9   :  { %v1275_v31 = vmul.f32 %v1273_v5, %v1269_v30 }
0x11eb   :  { %1277 = vrot.lane.b32.xlu2 %v1275_v31, %s1595_s19 }
0x1245   :  { %v1278_v37 = vpop.permute.xlu2 %1277 }
0x1246   :  { %v1280_v39 = vadd.f32 %v1278_v37, %v1270_v57  ;;  %v1208_v40 = vpop.permute.xlu1 %1207 }
0x1247   :  { %v1210_v42 = vadd.f32 %v1208_v40, %v1200_v26 }
0x1248   :  { %1547 = vtanh.f32 %v1280_v39  ;;  %v1289_v51 = vsub.f32 %v1280_v39, %v1149_v16 }
0x1249   :  { %1549 = vtanh.f32 %v1210_v42 }
0x124a   :  { %v1290_v21 = vadd.f32 %v1289_v51, %v1149_v16 }
0x124e   :  { %v1548_v44 = vpop.eup %1547 }
0x124f   :  { %v1550_v46 = vpop.eup %1549  ;;  %1283 = vrot.lane.b32.xlu1 %v1548_v44, %s1594_s18 }
0x1250   :  { %1213 = vrot.lane.b32.xlu0 %v1550_v46, %s1594_s18 }
0x12c1   :  { %v1284_v8 = vpop.permute.xlu1 %1283 }
0x12c2   :  { %v1286_v0 = vmul.f32 %v1284_v8, %v1269_v30  ;;  %v1214_v24 = vpop.permute.xlu0 %1213  ;;  %v1454_v30 = vld [vmem:[%s2242_s7] ss:$0 sm:$0xff] }
0x12c3   :  { %v1216_v32 = vmul.f32 %v1214_v24, %v1199_v62 }
0x12c4   :  { %v1287_v19 = vsub.f32 %v1286_v0, %v2185_v43 }
0x12c5   :  { %v1217_v2 = vsub.f32 %v1216_v32, %v2179_v41 }
0x12c6   :  { %v1288_v28 = vadd.f32 %v1287_v19, %v2185_v43 }
0x12c7   :  { %v1218_v49 = vadd.f32 %v1217_v2, %v2179_v41 }
0x12c8   :  { %1296 = vrot.lane.b32.xlu0 %v1288_v28, %s1594_s18 }
0x12c9   :  { %1292 = vrot.lane.b32.xlu2 %v1218_v49, %s1595_s19 }
0x1323   :  { %v1293_v17 = vpop.permute.xlu2 %1292 }
0x133a   :  { %v1297_v50 = vpop.permute.xlu0 %1296 }
0x133b   :  { %v1299_v35 = vsel %vm157_vm13, %v1293_v17, %v1297_v50 }
0x133c   :  { %1442 = vmatmul.msk.f32.vlgmr.msra.gmra.mxu1 %vm226_vm14, %v1299_v35 }
0x13b9   :  { %v1320_v52 = vpop.f32.mrf.mxu1 }
0x13ba   :  { %v1321_v53 = vadd.f32 %v2141_v48, %v1320_v52 }
0x13bc   :  { %v1323_v55 = vmul.f32 %v1321_v53, %v1785_v22 }
0x13be   :  { %v1443_v56 = vmul.f32 -1.442695, %v1323_v55 }
0x13c0   :  { %1551 = vpow2.f32 %v1443_v56 }
0x13c6   :  { %v1552_v43 = vpop.eup %1551 }
0x13c7   :  { %v1327_v33 = vadd.f32 1.0, %v1552_v43 }
0x13c9   :  { %1553 = vrcp.f32 %v1327_v33  ;;  %v1339_v60 = vand.u32 2147483648, %v1327_v33  ;;  %v1337_v27 = vand.u32 2147483647, %v1327_v33  ;;  %vm1333_vm4 = vweird.f32 %v1327_v33 }
0x13cb   :  { %v1340_v38 = vor.u32 1.1754944e-38, %v1339_v60  ;;  %vm1338_vm5 = vcmp.eq.f32.partialorder %v1337_v27, 8.507059e+37 }
0x13cf   :  { %v1554_v41 = vpop.eup %1553 }
0x13d0   :  { %v1329_v15 = vmul.f32 %v1554_v41, %v1327_v33  ;;  %vm1334_vm3 = vweird.f32 %v1554_v41 }
0x13d1   :  { %vm1335_vm14 = vmor %vm1333_vm4, %vm1334_vm3 }
0x13d2   :  { %v1330_v59 = vsub.f32 1.0, %v1329_v15 }
0x13d4   :  { %v1331_v14 = vmul.f32 %v1554_v41, %v1330_v59 }
0x13d6   :  { %v1332_v61 = vadd.f32 %v1554_v41, %v1331_v14 }
0x13d8   :  { %v1336_v63 = vsel %vm1335_vm14, %v1554_v41, %v1332_v61 }
0x13d9   :  { %v1341_v48 = vsel %vm1338_vm5, %v1340_v38, %v1336_v63 }
0x13da   :  { %v1343_v4 = vmul.f32 %v1341_v48, %v1785_v22  ;;  %v1365_v22 = vld [vmem:[#allocation3 + $0x8] sm:$0xff] }
0x13db   :  { %1391 = vmatpush.msrb.mxu3 %v1365_v22 }
0x13dc   :  { %v1344_v20 = vadd.f32 %v1343_v4, %v1798_v45  ;;  %v1364_v45 = vld [vmem:[#allocation3] sm:$0xff] }
0x13dd   :  { %1392 = vmatpush.msrb.mxu3 %v1364_v45 }
0x13de   :  { %1347 = vrot.lane.b32.xlu1 %v1344_v20, %s1594_s18  ;;  %v1345_v23 = vmul.f32 %v1344_v20, %v1290_v21 }
0x1450   :  { %v1348_v47 = vpop.permute.xlu1 %1347 }
0x1451   :  { %v1350_v54 = vmul.f32 %v1348_v47, %v1344_v20 }
0x1453   :  { %1352 = vrot.lane.b32.xlu2 %v1350_v54, %s1595_s19 }
0x14ad   :  { %v1353_v1 = vpop.permute.xlu2 %1352 }
0x14ae   :  { %v1355_v6 = vadd.f32 %v1353_v1, %v1345_v23 }
0x14b0   :  { %1555 = vtanh.f32 %v1355_v6 }
0x14b6   :  { %v1556_v10 = vpop.eup %1555 }
0x14b7   :  { %1358 = vrot.lane.b32.xlu0 %v1556_v10, %s1594_s18 }
0x1529   :  { %v1359_v18 = vpop.permute.xlu0 %1358 }
0x152a   :  { %v1361_v7 = vmul.f32 %v1359_v18, %v1344_v20 }
0x152c   :  { %v1362_v12 = vsub.f32 %v1361_v7, %v1288_v28 }
0x152e   :  { %v1363_v13 = vadd.f32 %v1362_v12, %v1288_v28 }
0x1530   :  { %1373 = vrot.lane.b32.xlu1 %v1363_v13, %s1595_s19 }
0x15a2   :  { %v1374_v3 = vpop.permute.xlu1 %1373 }
0x15a3   :  { %1444 = vmatmul.msk.f32.vlgmr.msrb.gmra.mxu3 %vm157_vm13, %v1374_v3 }
0x1626   :  { %v1394_v62 = vpop.f32.mrf.mxu3 }
0x1627   :  { %v1395_v58 = vadd.f32 %v1454_v30, %v1394_v62 }
0x1629   :  { %1397 = vst [vmem:[%s2243_s8] sm:$0xff] %v1395_v58 }
0x162a   :  { %1402 = vsyncpa [#allocation4], 1 }

</bundles_post_ra>
